<compile_context>
chip_gen: v6e
topology: v6e:2x2x1
jax: 0.10.0
libtpu: 0.0.40
codegen_flags: <defaults>
</compile_context>

<pallas_src>
import functools

import jax
import jax.numpy as jnp
from jax import lax
from jax.experimental import pallas as pl
from jax.experimental.pallas import tpu as pltpu


# ----------------------------- Pallas kernel --------------------------------


def _fused_mha_kernel(x_ref, w_qkv_ref, w_proj_ref, b_ref, o_ref,
                      qkv_scr, concat_scr, *, n_head, head_size):
    """One batch element: QKV proj + all-head masked attention + output projection."""
    T = x_ref.shape[1]
    E = x_ref.shape[2]

    x = x_ref[0]                                            # (T, E)  bf16

    # ---- fused QKV projection: one lane-dense matmul on the MXU, f32 accumulation ----
    qkv_scr[...] = jnp.dot(x, w_qkv_ref[...],               # (T, 3E) f32
                           preferred_element_type=jnp.float32)

    # ---- causal mask built in-kernel (no HBM mask traffic), hoisted out of the loop ----
    row = lax.broadcasted_iota(jnp.int32, (T, T), 0)
    col = lax.broadcasted_iota(jnp.int32, (T, T), 1)
    causal = row >= col                                     # True = keep

    scale = 1.0 / (head_size ** 0.5)

    # ---- per-head masked softmax attention (static unrolled loop; n_head is small) ----
    for h in range(n_head):
        lo = h * head_size
        hi = lo + head_size
        q = qkv_scr[:, lo:hi].astype(jnp.bfloat16)                  # (T, HS)
        k = qkv_scr[:, E + lo:E + hi].astype(jnp.bfloat16)          # (T, HS)
        v = qkv_scr[:, 2 * E + lo:2 * E + hi].astype(jnp.bfloat16)  # (T, HS)

        # scores = q @ k^T / sqrt(head_size); contract last dims of both -> no k copy.
        s = lax.dot_general(q, k, (((1,), (1,)), ((), ())),
                            preferred_element_type=jnp.float32) * scale   # (T, T)
        s = jnp.where(causal, s, -jnp.inf)

        # Numerically stable softmax, statistics in f32.
        m = jnp.max(s, axis=-1, keepdims=True)
        e = jnp.exp(s - m)
        denom = jnp.sum(e, axis=-1, keepdims=True)
        w_att = e * pl.reciprocal(denom, approx=True)               # (T, T) f32

        out_h = jnp.dot(w_att.astype(jnp.bfloat16), v,              # (T, HS) f32
                        preferred_element_type=jnp.float32)
        concat_scr[:, lo:hi] = out_h                                # concat kept in VMEM

    # ---- fused output projection: lane-dense (T,E)@(E,E) + bias ----
    y = jnp.dot(concat_scr[...].astype(jnp.bfloat16), w_proj_ref[...],
                preferred_element_type=jnp.float32)
    y = y + b_ref[...]                                              # (1, E) broadcasts
    o_ref[0] = y.astype(o_ref.dtype)


# ------------------------------- Wrapper -------------------------------------


def masked_multi_head_attention(x, wq, wk, wv, w_proj, b_proj):
    """
    x        : (B, T, E)              float32
    wq/wk/wv : (n_head, E, head_size) per-head weights, pre-transposed so q_h = x @ wq[h]
               (matches nn.Linear(E, head_size, bias=False))
    w_proj   : (E, E)                 output projection weight (transposed: y = x @ w + b)
    b_proj   : (E,)                   output projection bias
    returns  : (B, T, E) float32
    """
    B, T, E = x.shape
    n_head, _, head_size = wq.shape
    assert n_head * head_size == E

    # Stack heads into lane-dense matrices: columns [h*HS:(h+1)*HS] of Wq_all == wq[h].
    wq_all = jnp.transpose(wq, (1, 0, 2)).reshape(E, E)
    wk_all = jnp.transpose(wk, (1, 0, 2)).reshape(E, E)
    wv_all = jnp.transpose(wv, (1, 0, 2)).reshape(E, E)
    w_qkv = jnp.concatenate([wq_all, wk_all, wv_all], axis=1)       # (E, 3E)

    # bf16 MXU operands (halves x / weight DMA bytes); accumulation stays f32 in-kernel.
    x_bf16 = x.astype(jnp.bfloat16)
    w_qkv = w_qkv.astype(jnp.bfloat16)
    w_proj_bf16 = w_proj.astype(jnp.bfloat16)
    b2d = b_proj.reshape(1, E).astype(jnp.float32)

    kernel = functools.partial(_fused_mha_kernel, n_head=n_head, head_size=head_size)

    return pl.pallas_call(
        kernel,
        out_shape=jax.ShapeDtypeStruct((B, T, E), jnp.float32),
        grid_spec=pltpu.PrefetchScalarGridSpec(
            num_scalar_prefetch=0,
            grid=(B,),
            in_specs=[
                pl.BlockSpec((1, T, E), lambda b: (b, 0, 0)),       # x (per batch)
                pl.BlockSpec((E, 3 * E), lambda b: (0, 0)),         # stacked QKV weights
                pl.BlockSpec((E, E), lambda b: (0, 0)),             # proj weight
                pl.BlockSpec((1, E), lambda b: (0, 0)),             # proj bias
            ],
            out_specs=pl.BlockSpec((1, T, E), lambda b: (b, 0, 0)),  # lane-dense slab
            scratch_shapes=[
                pltpu.VMEM((T, 3 * E), jnp.float32),                # fused QKV result
                pltpu.VMEM((T, E), jnp.float32),                    # concatenated heads
            ],
        ),
        compiler_params=pltpu.CompilerParams(
            # Batch axis is parallel -> shards across the 2 TensorCores on v7x.
            dimension_semantics=("parallel",),
            # NOTE: at production shapes (E=1024, T>=256) raise vmem_limit_bytes so the
            # double-buffered bf16 weights + f32 scratches fit comfortably.
        ),
    )(x_bf16, w_qkv, w_proj_bf16, b2d)


# --------------------------- pure-JAX reference -------------------------------


def _reference(x, wq, wk, wv, w_proj, b_proj):
    """f32 reference mirroring the PyTorch module (dropout = identity / eval mode)."""
    n_head, _, head_size = wq.shape
    T = x.shape[1]
    tril = jnp.tril(jnp.ones((T, T), dtype=jnp.float32))
    outs = []
    for h in range(n_head):
        q = x @ wq[h]
        k = x @ wk[h]
        v = x @ wv[h]
        scores = (q @ jnp.swapaxes(k, -2, -1)) / (head_size ** 0.5)
        scores = jnp.where(tril == 0, -jnp.inf, scores)
        w_att = jax.nn.softmax(scores, axis=-1)
        outs.append(w_att @ v)
    concat = jnp.concatenate(outs, axis=-1)
    return concat @ w_proj + b_proj


# ---------------------------------- main --------------------------------------


if __name__ == "__main__":
    # Small shapes consistent with the module (head_size matches the spec's 64;
    # emb_size and sequence length are shrunk, emb_size % head_size == 0).
    B, T = 2, 64
    emb_size, head_size = 256, 64
    n_head = emb_size // head_size

    key = jax.random.PRNGKey(0)
    kx, kq, kk, kv, kp, kb = jax.random.split(key, 6)

    x = jax.random.normal(kx, (B, T, emb_size), dtype=jnp.float32)

    scale = 1.0 / (emb_size ** 0.5)
    wq = jax.random.normal(kq, (n_head, emb_size, head_size), jnp.float32) * scale
    wk = jax.random.normal(kk, (n_head, emb_size, head_size), jnp.float32) * scale
    wv = jax.random.normal(kv, (n_head, emb_size, head_size), jnp.float32) * scale
    w_proj = jax.random.normal(kp, (emb_size, emb_size), jnp.float32) * scale
    b_proj = jax.random.normal(kb, (emb_size,), jnp.float32) * 0.01

    out = masked_multi_head_attention(x, wq, wk, wv, w_proj, b_proj)
    out = jax.block_until_ready(out)

    ref = _reference(x, wq, wk, wv, w_proj, b_proj)
    assert out.shape == (B, T, emb_size)
    # bf16 MXU operands (with f32 accumulation and f32 softmax stats) give ~1e-2-level
    # relative error vs. the pure-f32 reference; tolerance set accordingly.
    assert jnp.allclose(out, ref, atol=5e-2, rtol=5e-2), "mismatch vs reference"

    print("KERNEL_OK")
</pallas_src>

<mosaic_0001>
module attributes {stable_mosaic.version = 11 : i64} {
  func.func @_fused_mha_kernel(%arg0: i32, %arg1: memref<1x64x256xbf16, #tpu.memory_space<vmem>>, %arg2: memref<256x768xbf16, #tpu.memory_space<vmem>>, %arg3: memref<256x256xbf16, #tpu.memory_space<vmem>>, %arg4: memref<1x256xf32, #tpu.memory_space<vmem>>, %arg5: memref<1x64x256xf32, #tpu.memory_space<vmem>>, %arg6: memref<64x768xf32, #tpu.memory_space<vmem>>, %arg7: memref<64x256xf32, #tpu.memory_space<vmem>>) attributes {dimension_semantics = [#tpu.dimension_semantics<parallel>], iteration_bounds = array<i64: 2>, scalar_prefetch = 0 : i64, scratch_operands = 2 : i64, tpu.core_type = #tpu.core_type<tc>, window_params = [{transform_indices = @transform_0, window_bounds = array<i64: 1, 64, 256>}, {pipeline_mode = #tpu.pipeline_mode<synchronous>, transform_indices = @transform_1, window_bounds = array<i64: 256, 768>}, {pipeline_mode = #tpu.pipeline_mode<synchronous>, transform_indices = @transform_2, window_bounds = array<i64: 256, 256>}, {pipeline_mode = #tpu.pipeline_mode<synchronous>, transform_indices = @transform_3, window_bounds = array<i64: 1, 256>}, {transform_indices = @transform_4, window_bounds = array<i64: 1, 64, 256>}]} {
    %c0 = arith.constant 0 : index
    %c0_0 = arith.constant 0 : index
    %c0_1 = arith.constant 0 : index
    %0 = vector.load %arg1[%c0, %c0_0, %c0_1] : memref<1x64x256xbf16, #tpu.memory_space<vmem>>, vector<1x64x256xbf16>
    %1 = vector.shape_cast %0 : vector<1x64x256xbf16> to vector<64x256xbf16>
    %c0_2 = arith.constant 0 : index
    %c0_3 = arith.constant 0 : index
    %2 = vector.load %arg2[%c0_2, %c0_3] : memref<256x768xbf16, #tpu.memory_space<vmem>>, vector<256x768xbf16>
    %cst = arith.constant dense<0.000000e+00> : vector<64x768xf32>
    %3 = tpu.matmul %1, %2, %cst {dimension_numbers = #tpu.dot_dimension_numbers<[1], [0], [0], [1], [0, 0, 1, 1], [], []>} : vector<64x256xbf16>, vector<256x768xbf16>, vector<64x768xf32> -> vector<64x768xf32>
    %c0_4 = arith.constant 0 : index
    %c0_5 = arith.constant 0 : index
    %4 = vector.load %arg6[%c0_4, %c0_5] : memref<64x768xf32, #tpu.memory_space<vmem>>, vector<64x768xf32>
    tpu.vector_store %arg6[%c0_4, %c0_5], %3 {strides = array<i32>} : memref<64x768xf32, #tpu.memory_space<vmem>>, vector<64x768xf32>,
    %5 = tpu.iota {dimensions = array<i32: 0>} : vector<64x64xi32>
    %6 = tpu.iota {dimensions = array<i32: 1>} : vector<64x64xi32>
    %7 = arith.cmpi sge, %5, %6 : vector<64x64xi32>
    %c0_6 = arith.constant 0 : index
    %c0_7 = arith.constant 0 : index
    %8 = vector.load %arg6[%c0_6, %c0_7] : memref<64x768xf32, #tpu.memory_space<vmem>>, vector<64x64xf32>
    %9 = arith.truncf %8 : vector<64x64xf32> to vector<64x64xbf16>
    %c0_8 = arith.constant 0 : index
    %c256 = arith.constant 256 : index
    %10 = vector.load %arg6[%c0_8, %c256] : memref<64x768xf32, #tpu.memory_space<vmem>>, vector<64x64xf32>
    %11 = arith.truncf %10 : vector<64x64xf32> to vector<64x64xbf16>
    %c0_9 = arith.constant 0 : index
    %c512 = arith.constant 512 : index
    %12 = vector.load %arg6[%c0_9, %c512] : memref<64x768xf32, #tpu.memory_space<vmem>>, vector<64x64xf32>
    %13 = arith.truncf %12 : vector<64x64xf32> to vector<64x64xbf16>
    %cst_10 = arith.constant dense<0.000000e+00> : vector<64x64xf32>
    %14 = tpu.matmul %9, %11, %cst_10 {dimension_numbers = #tpu.dot_dimension_numbers<[1], [1], [0], [0], [0, 0, 1, 0], [], []>} : vector<64x64xbf16>, vector<64x64xbf16>, vector<64x64xf32> -> vector<64x64xf32>
    %cst_11 = arith.constant 1.250000e-01 : f32
    %15 = vector.broadcast %cst_11 : f32 to vector<64x64xf32>
    %16 = arith.mulf %14, %15 : vector<64x64xf32>
    %cst_12 = arith.constant 0xFF800000 : f32
    %17 = vector.broadcast %cst_12 : f32 to vector<64x64xf32>
    %18 = arith.select %7, %16, %17 : vector<64x64xi1>, vector<64x64xf32>
    %cst_13 = arith.constant dense<0xFF800000> : vector<64xf32>
    %19 = vector.multi_reduction <maximumf>, %18, %cst_13 [1] : vector<64x64xf32> to vector<64xf32>
    %20 = vector.shape_cast %19 : vector<64xf32> to vector<64x1xf32>
    %21 = vector.broadcast %20 : vector<64x1xf32> to vector<64x64xf32>
    %22 = arith.subf %18, %21 : vector<64x64xf32>
    %23 = math.exp %22 : vector<64x64xf32>
    %cst_14 = arith.constant dense<0.000000e+00> : vector<64xf32>
    %24 = vector.multi_reduction <add>, %23, %cst_14 [1] : vector<64x64xf32> to vector<64xf32>
    %25 = vector.shape_cast %24 : vector<64xf32> to vector<64x1xf32>
    %26 = tpu.reciprocal %25 {approx = true} : vector<64x1xf32> -> vector<64x1xf32>
    %27 = vector.broadcast %26 : vector<64x1xf32> to vector<64x64xf32>
    %28 = arith.mulf %23, %27 : vector<64x64xf32>
    %29 = arith.truncf %28 : vector<64x64xf32> to vector<64x64xbf16>
    %cst_15 = arith.constant dense<0.000000e+00> : vector<64x64xf32>
    %30 = tpu.matmul %29, %13, %cst_15 {dimension_numbers = #tpu.dot_dimension_numbers<[1], [0], [0], [1], [0, 0, 1, 1], [], []>} : vector<64x64xbf16>, vector<64x64xbf16>, vector<64x64xf32> -> vector<64x64xf32>
    %c0_16 = arith.constant 0 : index
    %c0_17 = arith.constant 0 : index
    %31 = vector.load %arg7[%c0_16, %c0_17] : memref<64x256xf32, #tpu.memory_space<vmem>>, vector<64x64xf32>
    tpu.vector_store %arg7[%c0_16, %c0_17], %30 {strides = array<i32>} : memref<64x256xf32, #tpu.memory_space<vmem>>, vector<64x64xf32>,
    %c0_18 = arith.constant 0 : index
    %c64 = arith.constant 64 : index
    %32 = vector.load %arg6[%c0_18, %c64] : memref<64x768xf32, #tpu.memory_space<vmem>>, vector<64x64xf32>
    %33 = arith.truncf %32 : vector<64x64xf32> to vector<64x64xbf16>
    %c0_19 = arith.constant 0 : index
    %c320 = arith.constant 320 : index
    %34 = vector.load %arg6[%c0_19, %c320] : memref<64x768xf32, #tpu.memory_space<vmem>>, vector<64x64xf32>
    %35 = arith.truncf %34 : vector<64x64xf32> to vector<64x64xbf16>
    %c0_20 = arith.constant 0 : index
    %c576 = arith.constant 576 : index
    %36 = vector.load %arg6[%c0_20, %c576] : memref<64x768xf32, #tpu.memory_space<vmem>>, vector<64x64xf32>
    %37 = arith.truncf %36 : vector<64x64xf32> to vector<64x64xbf16>
    %cst_21 = arith.constant dense<0.000000e+00> : vector<64x64xf32>
    %38 = tpu.matmul %33, %35, %cst_21 {dimension_numbers = #tpu.dot_dimension_numbers<[1], [1], [0], [0], [0, 0, 1, 0], [], []>} : vector<64x64xbf16>, vector<64x64xbf16>, vector<64x64xf32> -> vector<64x64xf32>
    %cst_22 = arith.constant 1.250000e-01 : f32
    %39 = vector.broadcast %cst_22 : f32 to vector<64x64xf32>
    %40 = arith.mulf %38, %39 : vector<64x64xf32>
    %cst_23 = arith.constant 0xFF800000 : f32
    %41 = vector.broadcast %cst_23 : f32 to vector<64x64xf32>
    %42 = arith.select %7, %40, %41 : vector<64x64xi1>, vector<64x64xf32>
    %cst_24 = arith.constant dense<0xFF800000> : vector<64xf32>
    %43 = vector.multi_reduction <maximumf>, %42, %cst_24 [1] : vector<64x64xf32> to vector<64xf32>
    %44 = vector.shape_cast %43 : vector<64xf32> to vector<64x1xf32>
    %45 = vector.broadcast %44 : vector<64x1xf32> to vector<64x64xf32>
    %46 = arith.subf %42, %45 : vector<64x64xf32>
    %47 = math.exp %46 : vector<64x64xf32>
    %cst_25 = arith.constant dense<0.000000e+00> : vector<64xf32>
    %48 = vector.multi_reduction <add>, %47, %cst_25 [1] : vector<64x64xf32> to vector<64xf32>
    %49 = vector.shape_cast %48 : vector<64xf32> to vector<64x1xf32>
    %50 = tpu.reciprocal %49 {approx = true} : vector<64x1xf32> -> vector<64x1xf32>
    %51 = vector.broadcast %50 : vector<64x1xf32> to vector<64x64xf32>
    %52 = arith.mulf %47, %51 : vector<64x64xf32>
    %53 = arith.truncf %52 : vector<64x64xf32> to vector<64x64xbf16>
    %cst_26 = arith.constant dense<0.000000e+00> : vector<64x64xf32>
    %54 = tpu.matmul %53, %37, %cst_26 {dimension_numbers = #tpu.dot_dimension_numbers<[1], [0], [0], [1], [0, 0, 1, 1], [], []>} : vector<64x64xbf16>, vector<64x64xbf16>, vector<64x64xf32> -> vector<64x64xf32>
    %c0_27 = arith.constant 0 : index
    %c64_28 = arith.constant 64 : index
    %55 = vector.load %arg7[%c0_27, %c64_28] : memref<64x256xf32, #tpu.memory_space<vmem>>, vector<64x64xf32>
    tpu.vector_store %arg7[%c0_27, %c64_28], %54 {strides = array<i32>} : memref<64x256xf32, #tpu.memory_space<vmem>>, vector<64x64xf32>,
    %c0_29 = arith.constant 0 : index
    %c128 = arith.constant 128 : index
    %56 = vector.load %arg6[%c0_29, %c128] : memref<64x768xf32, #tpu.memory_space<vmem>>, vector<64x64xf32>
    %57 = arith.truncf %56 : vector<64x64xf32> to vector<64x64xbf16>
    %c0_30 = arith.constant 0 : index
    %c384 = arith.constant 384 : index
    %58 = vector.load %arg6[%c0_30, %c384] : memref<64x768xf32, #tpu.memory_space<vmem>>, vector<64x64xf32>
    %59 = arith.truncf %58 : vector<64x64xf32> to vector<64x64xbf16>
    %c0_31 = arith.constant 0 : index
    %c640 = arith.constant 640 : index
    %60 = vector.load %arg6[%c0_31, %c640] : memref<64x768xf32, #tpu.memory_space<vmem>>, vector<64x64xf32>
    %61 = arith.truncf %60 : vector<64x64xf32> to vector<64x64xbf16>
    %cst_32 = arith.constant dense<0.000000e+00> : vector<64x64xf32>
    %62 = tpu.matmul %57, %59, %cst_32 {dimension_numbers = #tpu.dot_dimension_numbers<[1], [1], [0], [0], [0, 0, 1, 0], [], []>} : vector<64x64xbf16>, vector<64x64xbf16>, vector<64x64xf32> -> vector<64x64xf32>
    %cst_33 = arith.constant 1.250000e-01 : f32
    %63 = vector.broadcast %cst_33 : f32 to vector<64x64xf32>
    %64 = arith.mulf %62, %63 : vector<64x64xf32>
    %cst_34 = arith.constant 0xFF800000 : f32
    %65 = vector.broadcast %cst_34 : f32 to vector<64x64xf32>
    %66 = arith.select %7, %64, %65 : vector<64x64xi1>, vector<64x64xf32>
    %cst_35 = arith.constant dense<0xFF800000> : vector<64xf32>
    %67 = vector.multi_reduction <maximumf>, %66, %cst_35 [1] : vector<64x64xf32> to vector<64xf32>
    %68 = vector.shape_cast %67 : vector<64xf32> to vector<64x1xf32>
    %69 = vector.broadcast %68 : vector<64x1xf32> to vector<64x64xf32>
    %70 = arith.subf %66, %69 : vector<64x64xf32>
    %71 = math.exp %70 : vector<64x64xf32>
    %cst_36 = arith.constant dense<0.000000e+00> : vector<64xf32>
    %72 = vector.multi_reduction <add>, %71, %cst_36 [1] : vector<64x64xf32> to vector<64xf32>
    %73 = vector.shape_cast %72 : vector<64xf32> to vector<64x1xf32>
    %74 = tpu.reciprocal %73 {approx = true} : vector<64x1xf32> -> vector<64x1xf32>
    %75 = vector.broadcast %74 : vector<64x1xf32> to vector<64x64xf32>
    %76 = arith.mulf %71, %75 : vector<64x64xf32>
    %77 = arith.truncf %76 : vector<64x64xf32> to vector<64x64xbf16>
    %cst_37 = arith.constant dense<0.000000e+00> : vector<64x64xf32>
    %78 = tpu.matmul %77, %61, %cst_37 {dimension_numbers = #tpu.dot_dimension_numbers<[1], [0], [0], [1], [0, 0, 1, 1], [], []>} : vector<64x64xbf16>, vector<64x64xbf16>, vector<64x64xf32> -> vector<64x64xf32>
    %c0_38 = arith.constant 0 : index
    %c128_39 = arith.constant 128 : index
    %79 = vector.load %arg7[%c0_38, %c128_39] : memref<64x256xf32, #tpu.memory_space<vmem>>, vector<64x64xf32>
    tpu.vector_store %arg7[%c0_38, %c128_39], %78 {strides = array<i32>} : memref<64x256xf32, #tpu.memory_space<vmem>>, vector<64x64xf32>,
    %c0_40 = arith.constant 0 : index
    %c192 = arith.constant 192 : index
    %80 = vector.load %arg6[%c0_40, %c192] : memref<64x768xf32, #tpu.memory_space<vmem>>, vector<64x64xf32>
    %81 = arith.truncf %80 : vector<64x64xf32> to vector<64x64xbf16>
    %c0_41 = arith.constant 0 : index
    %c448 = arith.constant 448 : index
    %82 = vector.load %arg6[%c0_41, %c448] : memref<64x768xf32, #tpu.memory_space<vmem>>, vector<64x64xf32>
    %83 = arith.truncf %82 : vector<64x64xf32> to vector<64x64xbf16>
    %c0_42 = arith.constant 0 : index
    %c704 = arith.constant 704 : index
    %84 = vector.load %arg6[%c0_42, %c704] : memref<64x768xf32, #tpu.memory_space<vmem>>, vector<64x64xf32>
    %85 = arith.truncf %84 : vector<64x64xf32> to vector<64x64xbf16>
    %cst_43 = arith.constant dense<0.000000e+00> : vector<64x64xf32>
    %86 = tpu.matmul %81, %83, %cst_43 {dimension_numbers = #tpu.dot_dimension_numbers<[1], [1], [0], [0], [0, 0, 1, 0], [], []>} : vector<64x64xbf16>, vector<64x64xbf16>, vector<64x64xf32> -> vector<64x64xf32>
    %cst_44 = arith.constant 1.250000e-01 : f32
    %87 = vector.broadcast %cst_44 : f32 to vector<64x64xf32>
    %88 = arith.mulf %86, %87 : vector<64x64xf32>
    %cst_45 = arith.constant 0xFF800000 : f32
    %89 = vector.broadcast %cst_45 : f32 to vector<64x64xf32>
    %90 = arith.select %7, %88, %89 : vector<64x64xi1>, vector<64x64xf32>
    %cst_46 = arith.constant dense<0xFF800000> : vector<64xf32>
    %91 = vector.multi_reduction <maximumf>, %90, %cst_46 [1] : vector<64x64xf32> to vector<64xf32>
    %92 = vector.shape_cast %91 : vector<64xf32> to vector<64x1xf32>
    %93 = vector.broadcast %92 : vector<64x1xf32> to vector<64x64xf32>
    %94 = arith.subf %90, %93 : vector<64x64xf32>
    %95 = math.exp %94 : vector<64x64xf32>
    %cst_47 = arith.constant dense<0.000000e+00> : vector<64xf32>
    %96 = vector.multi_reduction <add>, %95, %cst_47 [1] : vector<64x64xf32> to vector<64xf32>
    %97 = vector.shape_cast %96 : vector<64xf32> to vector<64x1xf32>
    %98 = tpu.reciprocal %97 {approx = true} : vector<64x1xf32> -> vector<64x1xf32>
    %99 = vector.broadcast %98 : vector<64x1xf32> to vector<64x64xf32>
    %100 = arith.mulf %95, %99 : vector<64x64xf32>
    %101 = arith.truncf %100 : vector<64x64xf32> to vector<64x64xbf16>
    %cst_48 = arith.constant dense<0.000000e+00> : vector<64x64xf32>
    %102 = tpu.matmul %101, %85, %cst_48 {dimension_numbers = #tpu.dot_dimension_numbers<[1], [0], [0], [1], [0, 0, 1, 1], [], []>} : vector<64x64xbf16>, vector<64x64xbf16>, vector<64x64xf32> -> vector<64x64xf32>
    %c0_49 = arith.constant 0 : index
    %c192_50 = arith.constant 192 : index
    %103 = vector.load %arg7[%c0_49, %c192_50] : memref<64x256xf32, #tpu.memory_space<vmem>>, vector<64x64xf32>
    tpu.vector_store %arg7[%c0_49, %c192_50], %102 {strides = array<i32>} : memref<64x256xf32, #tpu.memory_space<vmem>>, vector<64x64xf32>,
    %c0_51 = arith.constant 0 : index
    %c0_52 = arith.constant 0 : index
    %104 = vector.load %arg7[%c0_51, %c0_52] : memref<64x256xf32, #tpu.memory_space<vmem>>, vector<64x256xf32>
    %105 = arith.truncf %104 : vector<64x256xf32> to vector<64x256xbf16>
    %c0_53 = arith.constant 0 : index
    %c0_54 = arith.constant 0 : index
    %106 = vector.load %arg3[%c0_53, %c0_54] : memref<256x256xbf16, #tpu.memory_space<vmem>>, vector<256x256xbf16>
    %cst_55 = arith.constant dense<0.000000e+00> : vector<64x256xf32>
    %107 = tpu.matmul %105, %106, %cst_55 {dimension_numbers = #tpu.dot_dimension_numbers<[1], [0], [0], [1], [0, 0, 1, 1], [], []>} : vector<64x256xbf16>, vector<256x256xbf16>, vector<64x256xf32> -> vector<64x256xf32>
    %c0_56 = arith.constant 0 : index
    %c0_57 = arith.constant 0 : index
    %108 = vector.load %arg4[%c0_56, %c0_57] : memref<1x256xf32, #tpu.memory_space<vmem>>, vector<1x256xf32>
    %109 = vector.broadcast %108 : vector<1x256xf32> to vector<64x256xf32>
    %110 = arith.addf %107, %109 : vector<64x256xf32>
    %c0_58 = arith.constant 0 : index
    %c0_59 = arith.constant 0 : index
    %c0_60 = arith.constant 0 : index
    %111 = vector.load %arg5[%c0_58, %c0_59, %c0_60] : memref<1x64x256xf32, #tpu.memory_space<vmem>>, vector<1x64x256xf32>
    %112 = vector.shape_cast %111 : vector<1x64x256xf32> to vector<64x256xf32>
    %113 = vector.shape_cast %110 : vector<64x256xf32> to vector<1x64x256xf32>
    tpu.vector_store %arg5[%c0_58, %c0_59, %c0_60], %113 {strides = array<i32>} : memref<1x64x256xf32, #tpu.memory_space<vmem>>, vector<1x64x256xf32>,
    return
  }
  func.func @transform_0(%arg0: i32) -> (i32, i32, i32) {
    %c0_i32 = arith.constant 0 : i32
    %c0_i32_0 = arith.constant 0 : i32
    %c0_i32_1 = arith.constant 0 : i32
    return %arg0, %c0_i32, %c0_i32_0 : i32, i32, i32
  }
  func.func @transform_1(%arg0: i32) -> (i32, i32) {
    %c0_i32 = arith.constant 0 : i32
    %c0_i32_0 = arith.constant 0 : i32
    %c0_i32_1 = arith.constant 0 : i32
    return %c0_i32, %c0_i32_0 : i32, i32
  }
  func.func @transform_2(%arg0: i32) -> (i32, i32) {
    %c0_i32 = arith.constant 0 : i32
    %c0_i32_0 = arith.constant 0 : i32
    %c0_i32_1 = arith.constant 0 : i32
    return %c0_i32, %c0_i32_0 : i32, i32
  }
  func.func @transform_3(%arg0: i32) -> (i32, i32) {
    %c0_i32 = arith.constant 0 : i32
    %c0_i32_0 = arith.constant 0 : i32
    %c0_i32_1 = arith.constant 0 : i32
    return %c0_i32, %c0_i32_0 : i32, i32
  }
  func.func @transform_4(%arg0: i32) -> (i32, i32, i32) {
    %c0_i32 = arith.constant 0 : i32
    %c0_i32_0 = arith.constant 0 : i32
    %c0_i32_1 = arith.constant 0 : i32
    return %arg0, %c0_i32, %c0_i32_0 : i32, i32, i32
  }
}

</mosaic_0001>

<bundles_post_ra>
// kernel: tpu_custom_call.1
= control target key start
LH: loop header
LB: loop body
LE: loop exit
PB: predicated region body
PF: predicated region fallthrough
CT: control target
= control target key end

     0   :  { %9 = vsyncpa [#allocation5], 0  ;;  %s4857_s0 = inlined_call_operand.hbm [shape: bf16[2,64,256], index: 0, kind: input, shape index: {}]   ;;  %s4858_s1 = inlined_call_operand.hbm [shape: bf16[256,768], index: 1, kind: input, shape index: {}]   ;;  %s4859_s2 = inlined_call_operand.hbm [shape: bf16[256,256], index: 2, kind: input, shape index: {}]   ;;  %s4860_s3 = inlined_call_operand.vmem [shape: f32[1,256], index: 3, kind: input, shape index: {}]   ;;  %s4861_s4 = inlined_call_operand.hbm [shape: f32[2,64,256], index: 4, kind: output, shape index: {}]  }
   0x1   :  { %11 = vsyncpa [#allocation5 + $0x1], 0 }
   0x2   :  { %12 = vsyncpa [#allocation8], 0 }
   0x3   :  { %13 = vsyncpa [#allocation6], 0 }
   0x4   :  { %15 = vsyncpa [#allocation6 + $0x1], 0  ;;  %s3985_s15 = smov 0   ;;  %s3987_s16 = smov 0  }
   0x5   :  { %s3989_s17 = smov 0   ;;  %s3991_s18 = smov 0  }
   0x6 LB: > { %s4006_s19 = sadd.s32 4294967295, %s3947_s18   ;;  %s2997_s20 = sadd.s32 4294967294, %s3947_s18   ;;  %s3947_s18 = sphi %s3991_s18, %s4883_s18   ;;  %s3943_s17 = sphi %s3989_s17, %s4882_s17   ;;  %s3939_s16 = sphi %s3987_s16, %s4881_s16   ;;  %s3935_s15 = sphi %s3985_s15, %s4880_s15  }
   0x7   : > { %p41_p0 = scmp.ne.s32.totalorder %s3939_s16, %s3935_s15  ;;  %p4862_p1 = scmp.eq.s32.totalorder %s4006_s19, 0 }
   0x8   : > { %p134_p3 = scmp.eq.s32.totalorder %s2997_s20, 1  ;;  %p2998_p5 = scmp.ge.s32.totalorder %s3947_s18, 1 }
   0x9   : > { %p4015_p4 = por %p4862_p1, %p41_p0  ;;  %p141_p7 = scmp.lt.s32.totalorder %s3947_s18, 3 }
   0xa   : > { %p4020_p6 = por %p134_p3, %p41_p0  ;;  %s3949_s24 = smov [#allocation7]  }
   0xb   : > { %s4866_s21 = scalar_select %p4015_p4, 1, 0 }
   0xc   : > { %s4867_s22 = scalar_select %p4020_p6, 1, 0 }
   0xd   : > { %p4025_p8 = pnand %p2998_p5, %p141_p7  ;;  %s153_s25 = sshll.u32 %s3949_s24, 4  ;;  %s154_s25 = int_to_ptr.vmem [resolvable:$true] %s153_s25 }
   0xe   : > { %s3950_s27 = smov [#allocation9]   ;;  %s3810_s29 = scalar_lea.vmem %s154_s25, 12288 }
   0xf   : > { %s4868_s23 = scalar_select %p4025_p8, 1, 0 }
  0x10   : > { %p3405_p9 = pneg %p4025_p8  ;;  %s166_s28 = sshll.u32 %s3950_s27, 4  ;;  %s167_s28 = int_to_ptr.vmem [resolvable:$true] %s166_s28 }
  0x11   : > { %p3811_p13 = scmp.ne.s32.totalorder %s154_s25, %s3810_s29  ;;  %p3818_p5 = scmp.lt.s32.totalorder %s154_s25, %s154_s25 }
  0x12   : > { %p4034_p11 = pnand %p3405_p9, %p4862_p1  ;;  %p3819_p7 = scmp.lt.s32.totalorder %s3810_s29, %s3810_s29 }
  0x14   : > { %p3801_p12 = pneg %p4034_p11  ;;  %p3820_p10 = por %p3819_p7, %p3818_p5 }
  0x16   : > { %p3813_p0 = pnand %p3811_p13, %p3801_p12 }
  0x18   : > { %p3814_p3 = pneg %p3813_p0 }
  0x1a   : > { %p3821_p9 = pnand %p3820_p10, %p3814_p3 }
  0x1c   : > { %3824 = shalt.err (!%p3821_p9)
}
  0x1d   : > { %s3951_s30 = smov 384   ;;  %s3952_s5 = smov 24  }
  0x1e   : > { %3408 = dma.hbm_to_vmem [thread:$0]  (!%p4034_p11), %s4858_s1, 12288, %s154_s25, [#allocation8], %s3951_s30, %s3951_s30, %s3952_s5  }
  0x1f   : > { %s3836_s8 = scalar_lea.vmem %s167_s28, 4096  ;;  %p3844_p2 = scmp.lt.s32.totalorder %s167_s28, %s167_s28 }
  0x20   : > { %p3837_p1 = scmp.ne.s32.totalorder %s167_s28, %s3836_s8  ;;  %p3845_p6 = scmp.lt.s32.totalorder %s3836_s8, %s3836_s8 }
  0x22   : > { %p3839_p13 = pnand %p3837_p1, %p3801_p12  ;;  %p3846_p5 = por %p3845_p6, %p3844_p2 }
  0x24   : > { %p3840_p0 = pneg %p3839_p13 }
  0x26   : > { %p3847_p10 = pnand %p3846_p5, %p3840_p0 }
  0x28   : > { %3850 = shalt.err (!%p3847_p10)
}
  0x29   : > { %s3953_s9 = smov 128   ;;  %s3954_s10 = smov 8  }
  0x2a   : > { %3411 = dma.hbm_to_vmem [thread:$0]  (!%p4034_p11), %s4859_s2, 4096, %s167_s28, [#allocation8], %s3953_s9, %s3953_s9, %s3954_s10  }
  0x2b   : > { %s4060_s13 = sadd.s32 1, %s3947_s18   ;;  %s28_s20 = sadd.s32 1, %s3943_s17 }
  0x2c   : > { %s25_s14 = ssub.s32 %s3947_s18, %s4060_s13  ;;  %p35_p2 = scmp.ne.s32.totalorder %s3943_s17, %s3939_s16 }
  0x2d   : > { %p26_p1 = scmp.eq.s32.totalorder %s25_s14, 0  ;;  %p36_p6 = scmp.eq.s32.totalorder %s3947_s18, 0 }
  0x2e   : > { %p4870_p3 = scmp.eq.s32.totalorder %s4006_s19, 1  ;;  %p3422_p9 = scmp.lt.s32.totalorder %s3947_s18, 2 }
  0x2f   : > { %s4069_s24 = scalar_select %p26_p1, %s3943_s17, %s28_s20  }
  0x30   : > { %p37_p12 = por %p36_p6, %p35_p2  ;;  %p4073_p7 = por %p4870_p3, %p35_p2 }
  0x31   : > { %s183_s26 = sand.u32 1, %s3943_s17   ;;  %s3183_s28 = sshll.u32 %s3947_s18, 10 }
  0x32   : > { %s4871_s25 = scalar_select %p4073_p7, 1, 0 }
  0x33   : > { %s3002_s27 = sshll.u32 %s183_s26, 6  ;;  %s4083_s5 = scalar_lea.hbm %s4857_s0, %s3183_s28 }
  0x34   : > { %s187_s6 = scalar_lea.vmem [#allocation4], %s3002_s27  ;;  %p4087_p11 = pnand %p3422_p9, %p37_p12 }
  0x35   : > { %s194_s7 = sshll.u32 %s187_s6, 4  ;;  %s4091_s11 = scalar_lea.sflag [#allocation5], %s183_s26  ;;  %s4085_s7 = int_to_ptr.vmem [resolvable:$true] %s194_s7 }
  0x36   : > { %s3851_s12 = scalar_lea.hbm %s4083_s5, 1024  ;;  %p3853_p0 = pneg %p4087_p11 }
  0x37   : > { %p3852_p13 = scmp.ne.s32.totalorder %s4083_s5, %s3851_s12  ;;  %s3856_s27 = scalar_lea.hbm %s4857_s0, 2048 }
  0x38   : > { %p3857_p1 = scmp.lt.s32.totalorder %s4083_s5, %s4857_s0  ;;  %p3858_p2 = scmp.lt.s32.totalorder %s3856_s27, %s3851_s12 }
  0x39   : > { %p3854_p5 = pnand %p3853_p0, %p3852_p13 }
  0x3a   : > { %p3859_p6 = por %p3858_p2, %p3857_p1 }
  0x3b   : > { %p3855_p10 = pneg %p3854_p5 }
  0x3d   : > { %p3860_p12 = pnand %p3859_p6, %p3855_p10 }
  0x3f   : > { %3863 = shalt.err (!%p3860_p12)
}
  0x40   : > { %s3864_s26 = scalar_lea.vmem %s4085_s7, 1024  ;;  %s3955_s30 = smov [#allocation4]  }
  0x41   : > { %p3865_p3 = scmp.ne.s32.totalorder %s4085_s7, %s3864_s26  ;;  %s3869_s6 = sshll.u32 %s3955_s30, 4  ;;  %s3870_s6 = int_to_ptr.vmem [resolvable:$false] %s3869_s6 }
  0x42   : > { %s3871_s14 = scalar_lea.vmem %s3870_s6, 2048  ;;  %p3872_p5 = scmp.lt.s32.totalorder %s4085_s7, %s3870_s6 }
  0x43   : > { %p3867_p9 = pnand %p3865_p3, %p3853_p0  ;;  %p3873_p7 = scmp.lt.s32.totalorder %s3871_s14, %s3864_s26 }
  0x45   : > { %p3868_p13 = pneg %p3867_p9  ;;  %p3874_p4 = por %p3873_p7, %p3872_p5 }
  0x47   : > { %p3875_p8 = pnand %p3874_p4, %p3868_p13 }
  0x49   : > { %3878 = shalt.err (!%p3875_p8)
}
  0x4a   : > { %3415 = dma.hbm_to_vmem [thread:$0]  (!%p4087_p11), %s4083_s5, 1024, %s4085_s7, %s4091_s11, %s3953_s9, %s3953_s9, %s3954_s10  }
  0x4b   : > { %p4873_p0 = scmp.ne.s32.totalorder %s4868_s23, 0 }
  0x4c   : > { %s4118_s12 = sand.u32 (!%p4873_p0), 1, %s3939_s16   ;;  %p4874_p4 = scmp.ne.s32.totalorder (!%p4873_p0), %s4866_s21, 0 }
  0x4d   : > { %206 = sbr.rel (%p4873_p0) target bundleno = 2837 (0xb15), region = 36  ;;  %s3006_s20 = sshll.u32 (!%p4873_p0), %s4118_s12, 6 }
  0x4e   : > { %s209_s27 = scalar_lea.sflag (!%p4873_p0), [#allocation5], %s4118_s12  ;;  %s4122_s28 = scalar_lea.vmem (!%p4873_p0), [#allocation4], %s3006_s20 }
  0x52   : > { %3922 = dma.done.wait (%p4874_p4), %s209_s27, 1024  }
  0x53   : > { %3924 = vsyncadd (%p4874_p4), %s209_s27, 4294966272  ;;  %p4875_p8 = scmp.eq.s32.totalorder %s4006_s19, 0 }
  0x55   : > { %3926 = dma.done.wait (%p4875_p8), [#allocation8], 16384   ;;  %p4876_p7 = pmov %p4875_p8 }
  0x56   : > { %v3467_v0 = vld [vmem:[#allocation7 + $0x154] ss:$24 sps:$4 sm:$0xff]   ;;  %v3471_v2 = vld [vmem:[#allocation7 + $0x150] ss:$24 sps:$4 sm:$0xff]   ;;  %v3473_v4 = vld [vmem:[#allocation7 + $0x124] ss:$24 sps:$4 sm:$0xff]  }
  0x57   : > { %3928 = vsyncadd (%p4876_p7), [#allocation8], 4294950912  ;;  %v3469_v1 = vld [vmem:[#allocation7 + $0x15c] ss:$24 sps:$4 sm:$0xff]   ;;  %870 = vmatprep.subr.bf16.mxu0 %v3467_v0  ;;  %v3472_v3 = vld [vmem:[#allocation7 + $0x158] ss:$24 sps:$4 sm:$0xff]  }
  0x58   : > { %943 = vmatprep.subr.bf16.mxu1 %v3469_v1  ;;  %871 = vmatpush1.bf16.msra.mxu0 %v3471_v2  ;;  %v3475_v5 = vld [vmem:[#allocation7 + $0x12c] ss:$24 sps:$4 sm:$0xff]   ;;  %v3477_v6 = vld [vmem:[#allocation7 + $0x120] ss:$24 sps:$4 sm:$0xff]   ;;  %v3481_v9 = vld [vmem:[#allocation7 + $0xfc] ss:$24 sps:$4 sm:$0xff]  }
  0x59   : > { %944 = vmatpush1.bf16.msra.mxu1 %v3472_v3  ;;  %872 = vmatprep.subr.bf16.mxu0 %v3473_v4  ;;  %v3478_v7 = vld [vmem:[#allocation7 + $0x128] ss:$24 sps:$4 sm:$0xff]   ;;  %v3479_v8 = vld [vmem:[#allocation7 + $0xf4] ss:$24 sps:$4 sm:$0xff]   ;;  %v3484_v11 = vld [vmem:[#allocation7 + $0xf8] ss:$24 sps:$4 sm:$0xff]  }
  0x5a   : > { %945 = vmatprep.subr.bf16.mxu1 %v3475_v5  ;;  %v3483_v10 = vld [vmem:[#allocation7 + $0xf0] ss:$24 sps:$4 sm:$0xff]   ;;  %v3485_v12 = vld [vmem:[#allocation7 + $0xc4] ss:$24 sps:$4 sm:$0xff]   ;;  %v3489_v14 = vld [vmem:[#allocation7 + $0xc0] ss:$24 sps:$4 sm:$0xff]  }
  0x5b   : > { %v3487_v13 = vld [vmem:[#allocation7 + $0xcc] ss:$24 sps:$4 sm:$0xff]   ;;  %v3490_v15 = vld [vmem:[#allocation7 + $0xc8] ss:$24 sps:$4 sm:$0xff]   ;;  %v3493_v17 = vld [vmem:[#allocation7 + $0x9c] ss:$24 sps:$4 sm:$0xff]  }
  0x5c   : > { %873 = vmatpush1.bf16.msra.mxu0 %v3477_v6  ;;  %v3491_v16 = vld [vmem:[#allocation7 + $0x94] ss:$24 sps:$4 sm:$0xff]   ;;  %v3495_v18 = vld [vmem:[#allocation7 + $0x90] ss:$24 sps:$4 sm:$0xff]   ;;  %v3497_v20 = vld [vmem:[#allocation7 + $0x64] ss:$24 sps:$4 sm:$0xff]  }
  0x5d   : > { %946 = vmatpush1.bf16.msra.mxu1 %v3478_v7  ;;  %874 = vmatprep.subr.bf16.mxu0 %v3479_v8  ;;  %v3496_v19 = vld [vmem:[#allocation7 + $0x98] ss:$24 sps:$4 sm:$0xff]   ;;  %v3499_v21 = vld [vmem:[#allocation7 + $0x6c] ss:$24 sps:$4 sm:$0xff]   ;;  %v3502_v23 = vld [vmem:[#allocation7 + $0x68] ss:$24 sps:$4 sm:$0xff]  }
  0x5e   : > { %947 = vmatprep.subr.bf16.mxu1 %v3481_v9  ;;  %v3501_v22 = vld [vmem:[#allocation7 + $0x60] ss:$24 sps:$4 sm:$0xff]   ;;  %v3503_v24 = vld [vmem:[#allocation7 + $0x34] ss:$24 sps:$4 sm:$0xff]   ;;  %v3507_v26 = vld [vmem:[#allocation7 + $0x30] ss:$24 sps:$4 sm:$0xff]  }
  0x5f   : > { %v3505_v25 = vld [vmem:[#allocation7 + $0x3c] ss:$24 sps:$4 sm:$0xff]   ;;  %v3508_v27 = vld [vmem:[#allocation7 + $0x38] ss:$24 sps:$4 sm:$0xff]   ;;  %v3511_v29 = vld [vmem:[#allocation7 + $0xc] ss:$24 sps:$4 sm:$0xff]  }
  0x60   : > { %875 = vmatpush1.bf16.msra.mxu0 %v3483_v10  ;;  %v3509_v28 = vld [vmem:[#allocation7 + $0x4] ss:$24 sps:$4 sm:$0xff]   ;;  %v3513_v30 = vld [vmem:[#allocation7] ss:$24 sps:$4 sm:$0xff]   ;;  %v3515_v32 = vld [vmem:[#allocation7 + $0x2d4] ss:$24 sps:$4 sm:$0xff]  }
  0x61   : > { %948 = vmatpush1.bf16.msra.mxu1 %v3484_v11  ;;  %876 = vmatprep.subr.bf16.mxu0 %v3485_v12  ;;  %v3514_v31 = vld [vmem:[#allocation7 + $0x8] ss:$24 sps:$4 sm:$0xff]   ;;  %v3517_v33 = vld [vmem:[#allocation7 + $0x2dc] ss:$24 sps:$4 sm:$0xff]   ;;  %v3520_v35 = vld [vmem:[#allocation7 + $0x2d8] ss:$24 sps:$4 sm:$0xff]  }
  0x62   : > { %949 = vmatprep.subr.bf16.mxu1 %v3487_v13  ;;  %v3519_v34 = vld [vmem:[#allocation7 + $0x2d0] ss:$24 sps:$4 sm:$0xff]   ;;  %v3521_v36 = vld [vmem:[#allocation7 + $0x2a4] ss:$24 sps:$4 sm:$0xff]   ;;  %v3525_v38 = vld [vmem:[#allocation7 + $0x2a0] ss:$24 sps:$4 sm:$0xff]  }
  0x63   : > { %v3523_v37 = vld [vmem:[#allocation7 + $0x2ac] ss:$24 sps:$4 sm:$0xff]   ;;  %v3526_v39 = vld [vmem:[#allocation7 + $0x2a8] ss:$24 sps:$4 sm:$0xff]   ;;  %v3529_v41 = vld [vmem:[#allocation7 + $0x27c] ss:$24 sps:$4 sm:$0xff]  }
  0x64   : > { %877 = vmatpush1.bf16.msra.mxu0 %v3489_v14  ;;  %v3527_v40 = vld [vmem:[#allocation7 + $0x274] ss:$24 sps:$4 sm:$0xff]   ;;  %v3531_v42 = vld [vmem:[#allocation7 + $0x270] ss:$24 sps:$4 sm:$0xff]   ;;  %v3533_v44 = vld [vmem:[#allocation7 + $0x244] ss:$24 sps:$4 sm:$0xff]  }
  0x65   : > { %950 = vmatpush1.bf16.msra.mxu1 %v3490_v15  ;;  %878 = vmatprep.subr.bf16.mxu0 %v3491_v16  ;;  %v3532_v43 = vld [vmem:[#allocation7 + $0x278] ss:$24 sps:$4 sm:$0xff]   ;;  %v3535_v45 = vld [vmem:[#allocation7 + $0x24c] ss:$24 sps:$4 sm:$0xff]   ;;  %v3538_v47 = vld [vmem:[#allocation7 + $0x248] ss:$24 sps:$4 sm:$0xff]  }
  0x66   : > { %951 = vmatprep.subr.bf16.mxu1 %v3493_v17  ;;  %v3537_v46 = vld [vmem:[#allocation7 + $0x240] ss:$24 sps:$4 sm:$0xff]   ;;  %v4133_v48 = vld [vmem:[%s4122_s28 + $0x4] ss:$8 sps:$4 sm:$0xff]   ;;  %v3541_v50 = vld [vmem:[#allocation7 + $0x21c] ss:$24 sps:$4 sm:$0xff]  }
  0x67   : > { %v3539_v49 = vld [vmem:[#allocation7 + $0x214] ss:$24 sps:$4 sm:$0xff]   ;;  %975 = vmatprep.mubr.bf16.mxu1 %v4133_v48  ;;  %902 = vmatprep.mubr.bf16.mxu0 %v4133_v48  ;;  %v3543_v51 = vld [vmem:[#allocation7 + $0x210] ss:$24 sps:$4 sm:$0xff]   ;;  %v3545_v53 = vld [vmem:[#allocation7 + $0x1e4] ss:$24 sps:$4 sm:$0xff]  }
  0x68   : > { %879 = vmatpush1.bf16.msra.mxu0 %v3495_v18  ;;  %v3544_v52 = vld [vmem:[#allocation7 + $0x218] ss:$24 sps:$4 sm:$0xff]   ;;  %v3547_v54 = vld [vmem:[#allocation7 + $0x1ec] ss:$24 sps:$4 sm:$0xff]   ;;  %v3550_v56 = vld [vmem:[#allocation7 + $0x1e8] ss:$24 sps:$4 sm:$0xff]  }
  0x69   : > { %952 = vmatpush1.bf16.msra.mxu1 %v3496_v19  ;;  %880 = vmatprep.subr.bf16.mxu0 %v3497_v20  ;;  %v3549_v55 = vld [vmem:[#allocation7 + $0x1e0] ss:$24 sps:$4 sm:$0xff]   ;;  %v3551_v57 = vld [vmem:[#allocation7 + $0x1b4] ss:$24 sps:$4 sm:$0xff]   ;;  %v3555_v59 = vld [vmem:[#allocation7 + $0x1b0] ss:$24 sps:$4 sm:$0xff]  }
  0x6a   : > { %953 = vmatprep.subr.bf16.mxu1 %v3499_v21  ;;  %v3553_v58 = vld [vmem:[#allocation7 + $0x1bc] ss:$24 sps:$4 sm:$0xff]   ;;  %v3556_v60 = vld [vmem:[#allocation7 + $0x1b8] ss:$24 sps:$4 sm:$0xff]   ;;  %v3559_v62 = vld [vmem:[#allocation7 + $0x18c] ss:$24 sps:$4 sm:$0xff]  }
  0x6b   : > { %v3557_v61 = vld [vmem:[#allocation7 + $0x184] ss:$24 sps:$4 sm:$0xff]   ;;  %v3561_v63 = vld [vmem:[#allocation7 + $0x180] ss:$24 sps:$4 sm:$0xff]   ;;  %v3571_v5 = vld [vmem:[#allocation7 + $0x134] ss:$24 sps:$4 sm:$0xff]  }
  0x6c   : > { %881 = vmatpush1.bf16.msra.mxu0 %v3501_v22  ;;  %v3562_v0 = vld [vmem:[#allocation7 + $0x188] ss:$24 sps:$4 sm:$0xff]   ;;  %v3568_v1 = vld [vmem:[#allocation7 + $0x164] ss:$24 sps:$4 sm:$0xff]   ;;  %v4147_v7 = vld [vmem:[%s4122_s28 + $0x10] ss:$8 sps:$4 sm:$0xff]  }
  0x6d   : > { %954 = vmatpush1.bf16.msra.mxu1 %v3502_v23  ;;  %882 = vmatprep.subr.bf16.mxu0 %v3503_v24  ;;  %v4138_v2 = vld [vmem:[%s4122_s28] ss:$8 sps:$4 sm:$0xff]   ;;  %v4141_v4 = vld [vmem:[%s4122_s28 + $0x14] ss:$8 sps:$4 sm:$0xff]   ;;  %v4151_v10 = vld [vmem:[%s4122_s28 + $0x24] ss:$8 sps:$4 sm:$0xff]  }
  0x6e   : > { %955 = vmatprep.subr.bf16.mxu1 %v3505_v25  ;;  %v3566_v3 = vld [vmem:[#allocation7 + $0x160] ss:$24 sps:$4 sm:$0xff]   ;;  %v3569_v6 = vld [vmem:[#allocation7 + $0x130] ss:$24 sps:$4 sm:$0xff]   ;;  %v3577_v8 = vld [vmem:[#allocation7 + $0x104] ss:$24 sps:$4 sm:$0xff]  }
  0x6f   : > { %v3575_v9 = vld [vmem:[#allocation7 + $0x100] ss:$24 sps:$4 sm:$0xff]   ;;  %v3580_v11 = vld [vmem:[#allocation7 + $0xd4] ss:$24 sps:$4 sm:$0xff]   ;;  %v3578_v12 = vld [vmem:[#allocation7 + $0xd0] ss:$24 sps:$4 sm:$0xff]  }
  0x70   : > { %883 = vmatpush1.bf16.msra.mxu0 %v3507_v26  ;;  %v3586_v13 = vld [vmem:[#allocation7 + $0xa4] ss:$24 sps:$4 sm:$0xff]   ;;  %v3583_v14 = vld [vmem:[%s4122_s28 + $0x20] ss:$8 sps:$4 sm:$0xff]   ;;  %v3589_v17 = vld [vmem:[#allocation7 + $0x74] ss:$24 sps:$4 sm:$0xff]  }
  0x71   : > { %956 = vmatpush1.bf16.msra.mxu1 %v3508_v27  ;;  %884 = vmatprep.subr.bf16.mxu0 %v3509_v28  ;;  %v3584_v15 = vld [vmem:[#allocation7 + $0xa0] ss:$24 sps:$4 sm:$0xff]   ;;  %v3590_v16 = vld [vmem:[%s4122_s28 + $0x34] ss:$8 sps:$4 sm:$0xff]   ;;  %v3587_v18 = vld [vmem:[#allocation7 + $0x70] ss:$24 sps:$4 sm:$0xff]  }
  0x72   : > { %957 = vmatprep.subr.bf16.mxu1 %v3511_v29  ;;  %v3595_v19 = vld [vmem:[#allocation7 + $0x44] ss:$24 sps:$4 sm:$0xff]   ;;  %v3592_v20 = vld [vmem:[%s4122_s28 + $0x30] ss:$8 sps:$4 sm:$0xff]   ;;  %v3598_v22 = vld [vmem:[#allocation7 + $0x14] ss:$24 sps:$4 sm:$0xff]  }
  0x73   : > { %v3593_v21 = vld [vmem:[#allocation7 + $0x40] ss:$24 sps:$4 sm:$0xff]   ;;  %v3596_v23 = vld [vmem:[#allocation7 + $0x10] ss:$24 sps:$4 sm:$0xff]   ;;  %v3601_v24 = vld [vmem:[#allocation7 + $0x2e4] ss:$24 sps:$4 sm:$0xff]  }
  0x74   : > { %885 = vmatpush1.bf16.msra.mxu0 %v3513_v30  ;;  %v3599_v25 = vld [vmem:[#allocation7 + $0x2e0] ss:$24 sps:$4 sm:$0xff]   ;;  %v3604_v26 = vld [vmem:[#allocation7 + $0x2b4] ss:$24 sps:$4 sm:$0xff]   ;;  %v3602_v27 = vld [vmem:[#allocation7 + $0x2b0] ss:$24 sps:$4 sm:$0xff]  }
  0x75   : > { %958 = vmatpush1.bf16.msra.mxu1 %v3514_v31  ;;  %886 = vmatprep.subr.bf16.mxu0 %v3515_v32  ;;  %v3607_v28 = vld [vmem:[#allocation7 + $0x284] ss:$24 sps:$4 sm:$0xff]   ;;  %v3605_v29 = vld [vmem:[#allocation7 + $0x280] ss:$24 sps:$4 sm:$0xff]   ;;  %v3610_v30 = vld [vmem:[#allocation7 + $0x254] ss:$24 sps:$4 sm:$0xff]  }
  0x76   : > { %959 = vmatprep.subr.bf16.mxu1 %v3517_v33  ;;  %v3608_v31 = vld [vmem:[#allocation7 + $0x250] ss:$24 sps:$4 sm:$0xff]   ;;  %v3613_v32 = vld [vmem:[#allocation7 + $0x224] ss:$24 sps:$4 sm:$0xff]   ;;  %v3611_v33 = vld [vmem:[#allocation7 + $0x220] ss:$24 sps:$4 sm:$0xff]  }
  0x77   : > { %vm1192_vm0 = vcmask 523264   ;;  %s3956_s21 = smov 64   ;;  %vm1857_vm9 = vcmask 1048064   ;;  %s3009_s10 = sshll.u32 %s4118_s12, 7 }
  0x78   : > { %887 = vmatpush2.bf16.msra.mxu0 %v3519_v34  ;;  %v3616_v34 = vld [vmem:[#allocation7 + $0x1f4] ss:$24 sps:$4 sm:$0xff]   ;;  %s4789_s5 = scalar_lea.vmem [#allocation10], %s3009_s10  ;;  %s3184_s7 = sshll.u32 %s4006_s19, 11 }
  0x79   : > { %960 = vmatpush2.bf16.msra.mxu1 %v3520_v35  ;;  %888 = vmatprep.subr.bf16.mxu0 %v3521_v36  ;;  %v3614_v35 = vld [vmem:[#allocation7 + $0x1f0] ss:$24 sps:$4 sm:$0xff]   ;;  %v3619_v36 = vld [vmem:[#allocation7 + $0x1c4] ss:$24 sps:$4 sm:$0xff]   ;;  %s2905_s8 = sshll.u32 %s4789_s5, 4  ;;  %s4810_s26 = scalar_lea.hbm %s4861_s4, %s3184_s7  ;;  %s4812_s8 = int_to_ptr.vmem [resolvable:$true] %s2905_s8 }
  0x7a   : > { %961 = vmatprep.subr.bf16.mxu1 %v3523_v37  ;;  %v3617_v37 = vld [vmem:[#allocation7 + $0x1c0] ss:$24 sps:$4 sm:$0xff]   ;;  %s2892_s30 = scalar_lea.sflag [#allocation6], %s4118_s12  ;;  %s3879_s19 = scalar_lea.vmem %s4812_s8, 2048 }
  0x7b   : > { %p3880_p11 = scmp.ne.s32.totalorder %s4812_s8, %s3879_s19  ;;  %p4877_p10 = scmp.ne.s32.totalorder %s4871_s25, 0 }
  0x7c   : > { %889 = vmatpush2.bf16.msra.mxu0 %v3525_v38  ;;  %v3622_v38 = vld [vmem:[#allocation7 + $0x194] ss:$24 sps:$4 sm:$0xff]   ;;  %s3957_s6 = smov [#allocation10]  }
  0x7d   : > { %962 = vmatpush2.bf16.msra.mxu1 %v3526_v39  ;;  %890 = vmatprep.subr.bf16.mxu0 %v3527_v40  ;;  %v3620_v39 = vld [vmem:[#allocation7 + $0x190] ss:$24 sps:$4 sm:$0xff]   ;;  %p3881_p1 = pnand %p3880_p11, %p4877_p10  ;;  %s3883_s14 = sshll.u32 %s3957_s6, 4  ;;  %s3884_s14 = int_to_ptr.vmem [resolvable:$false] %s3883_s14 }
  0x7e   : > { %963 = vmatprep.subr.bf16.mxu1 %v3529_v41  ;;  %s3885_s20 = scalar_lea.vmem %s3884_s14, 4096  ;;  %p3886_p6 = scmp.lt.s32.totalorder %s4812_s8, %s3884_s14 }
  0x7f   : > { %p3882_p2 = pneg %p3881_p1  ;;  %p3887_p12 = scmp.lt.s32.totalorder %s3885_s20, %s3879_s19 }
  0x80   : > { %891 = vmatpush2.bf16.msra.mxu0 %v3531_v42 }
  0x81   : > { %964 = vmatpush2.bf16.msra.mxu1 %v3532_v43  ;;  %892 = vmatprep.subr.bf16.mxu0 %v3533_v44  ;;  %p3888_p3 = por %p3887_p12, %p3886_p6 }
  0x82   : > { %965 = vmatprep.subr.bf16.mxu1 %v3535_v45 }
  0x83   : > { %p3889_p9 = pnand %p3888_p3, %p3882_p2 }
  0x84   : > { %893 = vmatpush2.bf16.msra.mxu0 %v3537_v46 }
  0x85   : > { %966 = vmatpush2.bf16.msra.mxu1 %v3538_v47  ;;  %894 = vmatprep.subr.bf16.mxu0 %v3539_v49 }
  0x86   : > { %967 = vmatprep.subr.bf16.mxu1 %v3541_v50 }
  0x88   : > { %895 = vmatpush2.bf16.msra.mxu0 %v3543_v51 }
  0x89   : > { %968 = vmatpush2.bf16.msra.mxu1 %v3544_v52  ;;  %896 = vmatprep.subr.bf16.mxu0 %v3545_v53 }
  0x8a   : > { %969 = vmatprep.subr.bf16.mxu1 %v3547_v54 }
  0x8c   : > { %897 = vmatpush2.bf16.msra.mxu0 %v3549_v55 }
  0x8d   : > { %970 = vmatpush2.bf16.msra.mxu1 %v3550_v56  ;;  %898 = vmatprep.subr.bf16.mxu0 %v3551_v57 }
  0x8e   : > { %971 = vmatprep.subr.bf16.mxu1 %v3553_v58 }
  0x90   : > { %899 = vmatpush2.bf16.msra.mxu0 %v3555_v59 }
  0x91   : > { %972 = vmatpush2.bf16.msra.mxu1 %v3556_v60  ;;  %900 = vmatprep.subr.bf16.mxu0 %v3557_v61 }
  0x92   : > { %973 = vmatprep.subr.bf16.mxu1 %v3559_v62 }
  0x94   : > { %901 = vmatpush2.bf16.msra.mxu0 %v3561_v63 }
  0x95   : > { %974 = vmatpush2.bf16.msra.mxu1 %v3562_v0  ;;  %1016 = vmatprep.subr.bf16.mxu0 %v3568_v1 }
  0x97   : > { %903 = vmatmul.mubr.bf16.vlgmr.msra.gmra.mxu0 %v4138_v2 }
  0x98   : > { %976 = vmatmul.mubr.bf16.vlgmr.msra.gmra.mxu1 %v4138_v2  ;;  %1017 = vmatpush1.bf16.msra.mxu0 %v3566_v3 }
  0x99   : > { %985 = vmatprep.mubr.bf16.mxu1 %v4141_v4  ;;  %1018 = vmatprep.subr.bf16.mxu0 %v3571_v5 }
  0x9a   : > { %912 = vmatprep.mubr.bf16.mxu0 %v4141_v4 }
  0x9c   : > { %1019 = vmatpush1.bf16.msra.mxu0 %v3569_v6 }
  0x9d   : > { %1020 = vmatprep.subr.bf16.mxu0 %v3577_v8 }
  0x9f   : > { %913 = vmatmul.mubr.bf16.gmra.mxu0 %v4147_v7 }
  0xa0   : > { %986 = vmatmul.mubr.bf16.gmra.mxu1 %v4147_v7  ;;  %1021 = vmatpush1.bf16.msra.mxu0 %v3575_v9 }
  0xa1   : > { %995 = vmatprep.mubr.bf16.mxu1 %v4151_v10  ;;  %1022 = vmatprep.subr.bf16.mxu0 %v3580_v11 }
  0xa2   : > { %922 = vmatprep.mubr.bf16.mxu0 %v4151_v10 }
  0xa4   : > { %1023 = vmatpush1.bf16.msra.mxu0 %v3578_v12 }
  0xa5   : > { %1024 = vmatprep.subr.bf16.mxu0 %v3586_v13 }
  0xa7   : > { %923 = vmatmul.mubr.bf16.gmra.mxu0 %v3583_v14 }
  0xa8   : > { %996 = vmatmul.mubr.bf16.gmra.mxu1 %v3583_v14  ;;  %1025 = vmatpush1.bf16.msra.mxu0 %v3584_v15 }
  0xa9   : > { %1005 = vmatprep.mubr.bf16.mxu1 %v3590_v16  ;;  %1026 = vmatprep.subr.bf16.mxu0 %v3589_v17 }
  0xaa   : > { %932 = vmatprep.mubr.bf16.mxu0 %v3590_v16 }
  0xac   : > { %1027 = vmatpush1.bf16.msra.mxu0 %v3587_v18 }
  0xad   : > { %1028 = vmatprep.subr.bf16.mxu0 %v3595_v19 }
  0xaf   : > { %933 = vmatmul.mubr.bf16.gmra.mxu0 %v3592_v20 }
  0xb0   : > { %1006 = vmatmul.mubr.bf16.gmra.mxu1 %v3592_v20  ;;  %1029 = vmatpush1.bf16.msra.mxu0 %v3593_v21 }
  0xb1   : > { %1048 = vmatprep.mubr.bf16.mxu0 %v4133_v48  ;;  %1030 = vmatprep.subr.bf16.mxu0 %v3598_v22 }
  0xb4   : > { %1031 = vmatpush1.bf16.msra.mxu0 %v3596_v23 }
  0xb5   : > { %1032 = vmatprep.subr.bf16.mxu0 %v3601_v24 }
  0xb8   : > { %1033 = vmatpush2.bf16.msra.mxu0 %v3599_v25 }
  0xb9   : > { %1034 = vmatprep.subr.bf16.mxu0 %v3604_v26 }
  0xbc   : > { %1035 = vmatpush2.bf16.msra.mxu0 %v3602_v27 }
  0xbd   : > { %1036 = vmatprep.subr.bf16.mxu0 %v3607_v28 }
  0xc0   : > { %1037 = vmatpush2.bf16.msra.mxu0 %v3605_v29 }
  0xc1   : > { %1038 = vmatprep.subr.bf16.mxu0 %v3610_v30 }
  0xc4   : > { %1039 = vmatpush2.bf16.msra.mxu0 %v3608_v31 }
  0xc5   : > { %1040 = vmatprep.subr.bf16.mxu0 %v3613_v32 }
  0xc8   : > { %1041 = vmatpush2.bf16.msra.mxu0 %v3611_v33 }
  0xc9   : > { %1042 = vmatprep.subr.bf16.mxu0 %v3616_v34 }
  0xcc   : > { %1043 = vmatpush2.bf16.msra.mxu0 %v3614_v35 }
  0xcd   : > { %1044 = vmatprep.subr.bf16.mxu0 %v3619_v36 }
  0xd0   : > { %1045 = vmatpush2.bf16.msra.mxu0 %v3617_v37 }
  0xd1   : > { %1046 = vmatprep.subr.bf16.mxu0 %v3622_v38 }
  0xd4   : > { %1047 = vmatpush2.bf16.msra.mxu0 %v3620_v39 }
  0xd7   : > { %1049 = vmatmul.mubr.bf16.vlgmr.msra.gmra.mxu0 %v4138_v2 }
  0xd8   : > { %1058 = vmatprep.mubr.bf16.mxu0 %v4141_v4 }
  0xdf   : > { %1059 = vmatmul.mubr.bf16.gmra.mxu0 %v4147_v7 }
  0xe0   : > { %1068 = vmatprep.mubr.bf16.mxu0 %v4151_v10 }
  0xe7   : > { %1069 = vmatmul.mubr.bf16.gmra.mxu0 %v3583_v14 }
  0xe8   : > { %1078 = vmatprep.mubr.bf16.mxu0 %v3590_v16 }
  0xef   : > { %1079 = vmatmul.mubr.bf16.gmra.mxu0 %v3592_v20 }
 0x157   : > { %v904_v41 = vpop.f32.mrf.mxu0 }
 0x158   : > { %v977_v40 = vpop.f32.mrf.mxu1 }
 0x159   : > { %v906_v43 = vpop.f32.mrf.mxu0 }
 0x15a   : > { %v979_v42 = vpop.f32.mrf.mxu1 }
 0x15b   : > { %v908_v45 = vpop.f32.mrf.mxu0 }
 0x15c   : > { %v981_v44 = vpop.f32.mrf.mxu1  ;;  %v4165_v46 = vpack.c.bf16 %v908_v45, %v904_v41 }
 0x15d   : > { %v910_v48 = vpop.f32.mrf.mxu0  ;;  %v4199_v20 = vpack.c.bf16 %v981_v44, %v977_v40 }
 0x15e   : > { %v983_v47 = vpop.f32.mrf.mxu1  ;;  %v4169_v50 = vpack.c.bf16 %v910_v48, %v906_v43  ;;  %3257 = vmatprep.mubr.msk.bf16.mxu1 %vm1192_vm0, %v4165_v46 }
 0x15f   : > { %v4167_v49 = vpack.c.bf16 %v983_v47, %v979_v42  ;;  %v914_v52 = vpop.f32.mrf.mxu0  ;;  %v1206_v22 = vsel %vm1192_vm0, %v4199_v20, 0 }
 0x160   : > { %v987_v51 = vpop.f32.mrf.mxu1 }
 0x161   : > { %v916_v54 = vpop.f32.mrf.mxu0 }
 0x162   : > { %v989_v53 = vpop.f32.mrf.mxu1 }
 0x163   : > { %v918_v56 = vpop.f32.mrf.mxu0 }
 0x164   : > { %v991_v55 = vpop.f32.mrf.mxu1  ;;  %v4209_v24 = vpack.c.bf16 %v918_v56, %v914_v52 }
 0x165   : > { %v920_v58 = vpop.f32.mrf.mxu0  ;;  %v4193_v18 = vpack.c.bf16 %v991_v55, %v987_v51 }
 0x166   : > { %v993_v57 = vpop.f32.mrf.mxu1  ;;  %v4175_v60 = vpack.c.bf16 %v920_v58, %v916_v54 }
 0x167   : > { %v4173_v59 = vpack.c.bf16 %v993_v57, %v989_v53  ;;  %v924_v62 = vpop.f32.mrf.mxu0  ;;  %v1209_v21 = vsel %vm1192_vm0, %v4193_v18, 0  ;;  %v1137_v53 = vlaneseq }
 0x168   : > { %v997_v61 = vpop.f32.mrf.mxu1 }
 0x169   : > { %v926_v0 = vpop.f32.mrf.mxu0  ;;  %v4247_v54 = vshrl.u32 %v1137_v53, 7  ;;  %v4252_v56 = vand.u32 127, %v1137_v53 }
 0x16a   : > { %v999_v63 = vpop.f32.mrf.mxu1 }
 0x16b   : > { %v928_v2 = vpop.f32.mrf.mxu0  ;;  %v4250_v55 = vadd.s32 16, %v4247_v54  ;;  %v4257_v58 = vadd.s32 24, %v4247_v54  ;;  %vm1148_vm2 = vcmp.ge.s32.totalorder %v4247_v54, %v4252_v56 }
 0x16c   : > { %v1001_v1 = vpop.f32.mrf.mxu1  ;;  %v4207_v23 = vpack.c.bf16 %v928_v2, %v924_v62 }
 0x16d   : > { %v930_v4 = vpop.f32.mrf.mxu0  ;;  %v4183_v15 = vpack.c.bf16 %v1001_v1, %v997_v61  ;;  %vm1150_vm1 = vcmp.ge.s32.totalorder %v4250_v55, %v4252_v56  ;;  %vm1151_vm3 = vcmp.ge.s32.totalorder %v4257_v58, %v4252_v56 }
 0x16e   : > { %v1003_v3 = vpop.f32.mrf.mxu1  ;;  %v4179_v6 = vpack.c.bf16 %v930_v4, %v926_v0  ;;  %v4271_v4 = vadd.s32 48, %v4247_v54 }
 0x16f   : > { %v4177_v5 = vpack.c.bf16 %v1003_v3, %v999_v63  ;;  %v934_v8 = vpop.f32.mrf.mxu0  ;;  %v1212_v19 = vsel %vm1192_vm0, %v4183_v15, 0  ;;  %v4262_v63 = vadd.s32 8, %v4247_v54 }
 0x170   : > { %v1007_v7 = vpop.f32.mrf.mxu1  ;;  %vm1154_vm5 = vcmp.ge.s32.totalorder %v4271_v4, %v4252_v56 }
 0x171   : > { %v936_v10 = vpop.f32.mrf.mxu0  ;;  %vm1149_vm4 = vcmp.ge.s32.totalorder %v4262_v63, %v4252_v56 }
 0x172   : > { %v1009_v9 = vpop.f32.mrf.mxu1 }
 0x173   : > { %v938_v12 = vpop.f32.mrf.mxu0 }
 0x174   : > { %v1011_v11 = vpop.f32.mrf.mxu1  ;;  %v4215_v27 = vpack.c.bf16 %v938_v12, %v934_v8 }
 0x175   : > { %v4181_v13 = vpack.c.bf16 %v1011_v11, %v1007_v7  ;;  %v940_v14 = vpop.f32.mrf.mxu0  ;;  %v4280_v11 = vadd.s32 32, %v4247_v54 }
 0x176   : > { %v4189_v17 = vpack.c.bf16 %v940_v14, %v936_v10  ;;  %v1013_v51 = vpop.f32.mrf.mxu1 }
 0x177   : > { %3377 = vmatprep.subr.msk.bf16.mxu1 %vm1192_vm0, %v4181_v13  ;;  %v1215_v16 = vsel %vm1192_vm0, %v4181_v13, 0  ;;  %v4242_v52 = vpack.c.bf16 %v1013_v51, %v1009_v9  ;;  %vm1152_vm6 = vcmp.ge.s32.totalorder %v4280_v11, %v4252_v56 }
 0x178   : > { %3250 = vmatpush3.bf16.xpose.msra.mxu1 %v1215_v16 }
 0x179   : > { %3378 = vmatprep.subr.msk.bf16.mxu1 %vm1192_vm0, %v4183_v15 }
 0x180   : > { %3252 = vmatpush3.bf16.xpose.msra.mxu1 %v1212_v19 }
 0x181   : > { %3379 = vmatprep.subr.msk.bf16.mxu1 %vm1192_vm0, %v4193_v18 }
 0x188   : > { %3254 = vmatpush3.bf16.xpose.msra.mxu1 %v1209_v21 }
 0x189   : > { %3380 = vmatprep.subr.msk.bf16.mxu1 %vm1192_vm0, %v4199_v20 }
 0x190   : > { %3256 = vmatpush3.bf16.xpose.msra.mxu1 %v1206_v22 }
 0x197   : > { %3258 = vmatmul.mubr.msk.bf16.vlgmr.msra.gmra.mxu1 %vm1192_vm0, %v4209_v24  ;;  %v1050_v25 = vpop.f32.mrf.mxu0 }
 0x198   : > { %3261 = vmatprep.mubr.msk.bf16.mxu1 %vm1192_vm0, %v4207_v23 }
 0x199   : > { %v1052_v26 = vpop.f32.mrf.mxu0 }
 0x19b   : > { %v1054_v28 = vpop.f32.mrf.mxu0 }
 0x19c   : > { %v4237_v48 = vpack.c.bf16 %v1054_v28, %v1050_v25 }
 0x19d   : > { %v1056_v29 = vpop.f32.mrf.mxu0 }
 0x19e   : > { %v4217_v30 = vpack.c.bf16 %v1056_v29, %v1052_v26 }
 0x19f   : > { %3262 = vmatmul.mubr.msk.bf16.gmra.mxu1 %vm1192_vm0, %v4215_v27  ;;  %v1060_v31 = vpop.f32.mrf.mxu0 }
 0x1a1   : > { %v1062_v32 = vpop.f32.mrf.mxu0 }
 0x1a3   : > { %v1064_v33 = vpop.f32.mrf.mxu0 }
 0x1a4   : > { %v4233_v47 = vpack.c.bf16 %v1064_v33, %v1060_v31 }
 0x1a5   : > { %v1066_v34 = vpop.f32.mrf.mxu0 }
 0x1a6   : > { %v4221_v35 = vpack.c.bf16 %v1066_v34, %v1062_v32 }
 0x1a7   : > { %v1070_v36 = vpop.f32.mrf.mxu0 }
 0x1a9   : > { %v1072_v37 = vpop.f32.mrf.mxu0 }
 0x1ab   : > { %v1074_v38 = vpop.f32.mrf.mxu0 }
 0x1ac   : > { %v4227_v44 = vpack.c.bf16 %v1074_v38, %v1070_v36  ;;  %v4313_v36 = vadd.s32 56, %v4247_v54 }
 0x1ad   : > { %v1076_v39 = vpop.f32.mrf.mxu0 }
 0x1ae   : > { %v4223_v40 = vpack.c.bf16 %v1076_v39, %v1072_v37  ;;  %vm1155_vm7 = vcmp.ge.s32.totalorder %v4313_v36, %v4252_v56  ;;  %v4318_v39 = vadd.s32 40, %v4247_v54 }
 0x1af   : > { %v1080_v41 = vpop.f32.mrf.mxu0 }
 0x1b0   : > { %vm1153_vm8 = vcmp.ge.s32.totalorder %v4318_v39, %v4252_v56 }
 0x1b1   : > { %v4225_v42 = vpop.f32.mrf.mxu0 }
 0x1b3   : > { %v1084_v43 = vpop.f32.mrf.mxu0 }
 0x1b4   : > { %v4229_v45 = vpack.c.bf16 %v1084_v43, %v1080_v41 }
 0x1b6   : > { %3265 = vmatprep.subr.bf16.mxu1 %v4229_v45 }
 0x1b7   : > { %3266 = vmatpush3.bf16.msra.mxu1 %v4229_v45 }
 0x1b8   : > { %3267 = vmatprep.subr.bf16.mxu1 %v4227_v44 }
 0x1bb   : > { %3268 = vmatpush3.bf16.msra.mxu1 %v4227_v44 }
 0x1bc   : > { %3269 = vmatprep.subr.bf16.mxu1 %v4233_v47 }
 0x1bf   : > { %3270 = vmatpush3.bf16.msra.mxu1 %v4233_v47 }
 0x1c0   : > { %3271 = vmatprep.subr.bf16.mxu1 %v4237_v48 }
 0x1c3   : > { %3272 = vmatpush3.bf16.msra.mxu1 %v4237_v48 }
 0x1c4   : > { %3385 = vmatprep.subr.msk.bf16.mxu1 %vm1192_vm0, %v4242_v52 }
 0x257   : > { %v3259_v57 = vpop.f32.mrf.mxu1 }
 0x258   : > { %v1284_v61 = vmul.f32 0.125, %v3259_v57 }
 0x259   : > { %v1251_v62 = vpop.f32.mrf.mxu1 }
 0x25a   : > { %v1282_v0 = vmul.f32 0.125, %v1251_v62  ;;  %v1292_v1 = vsel %vm1150_vm1, %v1284_v61, -inf }
 0x25b   : > { %v3260_v2 = vpop.f32.mrf.mxu1  ;;  %v1304_v3 = vsel %vm1192_vm0, %v1292_v1, -inf }
 0x25c   : > { %v1285_v7 = vmul.f32 0.125, %v3260_v2  ;;  %1305 = vmax.xlane.f32.xlu1 %v1304_v3  ;;  %v1290_v8 = vsel %vm1148_vm2, %v1282_v0, -inf }
 0x25d   : > { %v1254_v9 = vpop.f32.mrf.mxu1  ;;  %v1298_v10 = vsel %vm1192_vm0, %v1290_v8, -inf }
 0x25e   : > { %v1283_v12 = vmul.f32 0.125, %v1254_v9  ;;  %1299 = vmax.xlane.f32.xlu0 %v1298_v10  ;;  %v1293_v14 = vsel %vm1151_vm3, %v1285_v7, -inf }
 0x25f   : > { %v1307_v16 = vsel %vm1192_vm0, %v1293_v14, -inf  ;;  %v3263_v19 = vpop.f32.mrf.mxu1 }
 0x260   : > { %1308 = vmax.xlane.f32.xlu1 %v1307_v16  ;;  %v1288_v21 = vmul.f32 0.125, %v3263_v19  ;;  %v1291_v22 = vsel %vm1149_vm4, %v1283_v12, -inf }
 0x261   : > { %v1301_v25 = vsel %vm1192_vm0, %v1291_v22, -inf  ;;  %v1267_v26 = vpop.f32.mrf.mxu1 }
 0x262   : > { %1302 = vmax.xlane.f32.xlu0 %v1301_v25  ;;  %v1286_v28 = vmul.f32 0.125, %v1267_v26  ;;  %v4297_v29 = vsel %vm1154_vm5, %v1288_v21, -inf }
 0x263   : > { %v1316_v31 = vsel %vm1192_vm0, %v4297_v29, -inf  ;;  %v3264_v34 = vpop.f32.mrf.mxu1 }
 0x264   : > { %v4304_v32 = vsel %vm1152_vm6, %v1286_v28, -inf  ;;  %v1289_v37 = vmul.f32 0.125, %v3264_v34 }
 0x265   : > { %v1310_v33 = vsel %vm1192_vm0, %v4304_v32, -inf  ;;  %v1270_v38 = vpop.f32.mrf.mxu1 }
 0x266   : > { %1317 = vmax.xlane.f32.xlu0 %v1316_v31  ;;  %v1287_v41 = vmul.f32 0.125, %v1270_v38 }
 0x268   : > { %v1295_v43 = vsel %vm1153_vm8, %v1287_v41, -inf }
 0x269   : > { %v1313_v51 = vsel %vm1192_vm0, %v1295_v43, -inf }
 0x26a   : > { %1311 = vmax.xlane.f32.xlu0 %v1310_v33 }
 0x271   : > { %1531 = vrot.lane.b32.xlu1 %v4183_v15, %s3956_s21  ;;  %v1297_v15 = vsel %vm1155_vm7, %v1289_v37, -inf }
 0x280   : > { %1533 = vrot.lane.b32.xlu0 %v4181_v13, %s3956_s21  ;;  %v1319_v13 = vsel %vm1192_vm0, %v1297_v15, -inf }
 0x295   : > { %1320 = vmax.xlane.f32.xlu1 %v1319_v13 }
 0x299   : > { %1314 = vmax.xlane.f32.xlu1 %v1313_v51 }
 0x2aa   : > { %1527 = vrot.lane.b32.xlu1 %v4199_v20, %s3956_s21 }
 0x2ae   : > { %1515 = vrot.lane.b32.xlu1 %v4165_v46, %s3956_s21 }
 0x2e5   : > { %v1306_v53 = vpop.xlane.xlu1 %1305 }
 0x2e6   : > { %v1324_v57 = vsub.f32 %v1292_v1, %v1306_v53 }
 0x2e7   : > { %v1300_v61 = vpop.xlane.xlu0 %1299 }
 0x2e8   : > { %v1334_v62 = vmul.f32 1.442695, %v1324_v57  ;;  %v1322_v0 = vsub.f32 %v1290_v8, %v1300_v61 }
 0x2e9   : > { %v1309_v2 = vpop.xlane.xlu1 %1308 }
 0x2ea   : > { %3671 = vpow2.f32 %v1334_v62  ;;  %v1330_v3 = vmul.f32 1.442695, %v1322_v0  ;;  %v1325_v7 = vsub.f32 %v1293_v14, %v1309_v2 }
 0x2eb   : > { %v1303_v9 = vpop.xlane.xlu0 %1302 }
 0x2ec   : > { %3673 = vpow2.f32 %v1330_v3  ;;  %v1336_v10 = vmul.f32 1.442695, %v1325_v7  ;;  %v1323_v12 = vsub.f32 %v1291_v22, %v1303_v9 }
 0x2ed   : > { %v1532_v25 = vpop.permute.xlu1 %1531 }
 0x2ee   : > { %3675 = vpow2.f32 %v1336_v10  ;;  %v1332_v16 = vmul.f32 1.442695, %v1323_v12  ;;  %v1554_v33 = vsel %vm1192_vm0, %v1532_v25, 0 }
 0x2ef   : > { %v1318_v19 = vpop.xlane.xlu0 %1317 }
 0x2f0   : > { %3677 = vpow2.f32 %v1332_v16  ;;  %v1328_v37 = vsub.f32 %v4297_v29, %v1318_v19 }
 0x2f2   : > { %v1342_v38 = vmul.f32 1.442695, %v1328_v37 }
 0x2f3   : > { %v1312_v20 = vpop.xlane.xlu0 %1311 }
 0x2f4   : > { %v1326_v41 = vsub.f32 %v4304_v32, %v1312_v20  ;;  %3679 = vpow2.f32 %v1342_v38 }
 0x2f6   : > { %v1338_v51 = vmul.f32 1.442695, %v1326_v41 }
 0x2f7   : > { %v4334_v21 = vpop.eup %3671  ;;  %v1534_v46 = vpop.permute.xlu0 %1533 }
 0x2f8   : > { %v1557_v1 = vsel %vm1192_vm0, %v1534_v46, 0  ;;  %3381 = vmatprep.subr.msk.bf16.mxu0 %vm1192_vm0, %v1534_v46  ;;  %v1352_v8 = vsel %vm1192_vm0, %v4334_v21, 0.0  ;;  %3681 = vpow2.f32 %v1338_v51 }
 0x2f9   : > { %v4340_v14 = vpop.eup %3673  ;;  %1353 = vadd.xlane.f32.xlu0 %v1352_v8  ;;  %3282 = vmatpush3.bf16.xpose.msra.mxu0 %v1557_v1 }
 0x2fa   : > { %3382 = vmatprep.subr.msk.bf16.mxu0 %vm1192_vm0, %v1532_v25  ;;  %v1346_v26 = vsel %vm1192_vm0, %v4340_v14, 0.0 }
 0x2fb   : > { %v3676_v22 = vpop.eup %3675 }
 0x2fc   : > { %v1355_v28 = vsel %vm1192_vm0, %v3676_v22, 0.0 }
 0x2fd   : > { %v3678_v31 = vpop.eup %3677  ;;  %1347 = vadd.xlane.f32.xlu0 %v1346_v26  ;;  %1356 = vadd.xlane.f32.xlu1 %v1355_v28 }
 0x2fe   : > { %v1349_v34 = vsel %vm1192_vm0, %v3678_v31, 0.0 }
 0x301   : > { %3284 = vmatpush3.bf16.xpose.msra.mxu0 %v1554_v33  ;;  %1350 = vadd.xlane.f32.xlu1 %v1349_v34 }
 0x312   : > { %1517 = vrot.lane.b32.xlu1 %v4209_v24, %s3956_s21 }
 0x313   : > { %1529 = vrot.lane.b32.xlu0 %v4193_v18, %s3956_s21  ;;  %v4355_v18 = vpop.eup %3679 }
 0x314   : > { %v1364_v29 = vsel %vm1192_vm0, %v4355_v18, 0.0  ;;  %v4359_v32 = vpop.eup %3681 }
 0x31e   : > { %v1321_v13 = vpop.xlane.xlu1 %1320 }
 0x31f   : > { %v1329_v53 = vsub.f32 %v1297_v15, %v1321_v13  ;;  %v1924_v13 = vsel %vm1192_vm0, %v4242_v52, 0 }
 0x321   : > { %v1344_v62 = vmul.f32 1.442695, %v1329_v53 }
 0x322   : > { %v1315_v57 = vpop.xlane.xlu1 %1314 }
 0x323   : > { %v1327_v61 = vsub.f32 %v1295_v43, %v1315_v57  ;;  %v1358_v43 = vsel %vm1192_vm0, %v4359_v32, 0.0 }
 0x325   : > { %v1340_v0 = vmul.f32 1.442695, %v1327_v61 }
 0x326   : > { %v1528_v2 = vpop.permute.xlu1 %1527 }
 0x327   : > { %3683 = vpow2.f32 %v1340_v0 }
 0x328   : > { %3685 = vpow2.f32 %v1344_v62 }
 0x32a   : > { %v1516_v24 = vpop.permute.xlu1 %1515 }
 0x32b   : > { %3289 = vmatprep.mubr.msk.bf16.mxu0 %vm1192_vm0, %v1516_v24 }
 0x332   : > { %1365 = vadd.xlane.f32.xlu0 %v1364_v29 }
 0x334   : > { %v4361_v15 = vpop.eup %3683 }
 0x335   : > { %v1361_v3 = vsel %vm1192_vm0, %v4361_v15, 0.0  ;;  %v4367_v7 = vpop.eup %3685 }
 0x336   : > { %1359 = vadd.xlane.f32.xlu1 %v1358_v43  ;;  %1362 = vadd.xlane.f32.xlu0 %v1361_v3  ;;  %v1367_v9 = vsel %vm1192_vm0, %v4367_v7, 0.0 }
 0x33a   : > { %1368 = vadd.xlane.f32.xlu1 %v1367_v9 }
 0x34b   : > { %1521 = vrot.lane.b32.xlu1 %v4215_v27, %s3956_s21  ;;  %v1548_v27 = vsel %vm1192_vm0, %v1528_v2, 0 }
 0x34c   : > { %1519 = vrot.lane.b32.xlu0 %v4207_v23, %s3956_s21 }
 0x382   : > { %v1354_v10 = vpop.xlane.xlu0 %1353 }
 0x386   : > { %v1348_v12 = vpop.xlane.xlu0 %1347  ;;  %v1357_v16 = vpop.xlane.xlu1 %1356 }
 0x387   : > { %3687 = vrcp.f32 %v1357_v16 }
 0x388   : > { %3689 = vrcp.f32 %v1348_v12 }
 0x389   : > { %3691 = vrcp.f32 %v1354_v10 }
 0x38a   : > { %v1530_v19 = vpop.permute.xlu0 %1529  ;;  %v1351_v20 = vpop.xlane.xlu1 %1350 }
 0x38b   : > { %v1551_v46 = vsel %vm1192_vm0, %v1530_v19, 0  ;;  %3693 = vrcp.f32 %v1351_v20  ;;  %3383 = vmatprep.subr.msk.bf16.mxu0 %vm1192_vm0, %v1530_v19 }
 0x38c   : > { %3286 = vmatpush3.bf16.xpose.msra.mxu0 %v1551_v46 }
 0x38d   : > { %3384 = vmatprep.subr.msk.bf16.mxu0 %vm1192_vm0, %v1528_v2 }
 0x38e   : > { %v1518_v37 = vpop.permute.xlu1 %1517 }
 0x394   : > { %3288 = vmatpush3.bf16.xpose.msra.mxu0 %v1548_v27  ;;  %v3688_v23 = vpop.eup %3687 }
 0x395   : > { %v3690_v1 = vpop.eup %3689  ;;  %v1381_v26 = vmul.f32 %v3688_v23, %v3676_v22  ;;  %v1915_v22 = vsel %vm1192_vm0, %v4167_v49, 0 }
 0x396   : > { %v3692_v8 = vpop.eup %3691  ;;  %v1378_v28 = vmul.f32 %v3690_v1, %v4340_v14  ;;  %v1921_v14 = vsel %vm1192_vm0, %v4177_v5, 0 }
 0x397   : > { %v1380_v34 = vmul.f32 %v3692_v8, %v4334_v21  ;;  %v1918_v21 = vsel %vm1192_vm0, %v4173_v59, 0 }
 0x398   : > { %v3694_v25 = vpop.eup %3693 }
 0x399   : > { %v1379_v33 = vmul.f32 %v3694_v25, %v3678_v31  ;;  %v1387_v41 = vpack.c.bf16 %v1381_v26, %v1380_v34 }
 0x39b   : > { %3290 = vmatmul.mubr.msk.bf16.vlgmr.msra.gmra.mxu0 %vm1192_vm0, %v1518_v37  ;;  %v1386_v38 = vpack.c.bf16 %v1379_v33, %v1378_v28 }
 0x39d   : > { %3273 = vmatprep.mubr.msk.bf16.mxu1 %vm1192_vm0, %v1386_v38 }
 0x39e   : > { %3274 = vmatmul.mubr.msk.bf16.vlgmr.msra.gmra.mxu1 %vm1192_vm0, %v1387_v41 }
 0x39f   : > { %3314 = vmatpush3.bf16.xpose.msra.mxu1 %v1924_v13 }
 0x3a0   : > { %3386 = vmatprep.subr.msk.bf16.mxu1 %vm1192_vm0, %v4177_v5 }
 0x3a7   : > { %3316 = vmatpush3.bf16.xpose.msra.mxu1 %v1921_v14 }
 0x3a8   : > { %3387 = vmatprep.subr.msk.bf16.mxu1 %vm1192_vm0, %v4173_v59 }
 0x3af   : > { %3318 = vmatpush3.bf16.xpose.msra.mxu1 %v1918_v21 }
 0x3b0   : > { %3388 = vmatprep.subr.msk.bf16.mxu1 %vm1192_vm0, %v4167_v49 }
 0x3b7   : > { %3320 = vmatpush3.bf16.xpose.msra.mxu1 %v1915_v22 }
 0x3bb   : > { %v1366_v31 = vpop.xlane.xlu0 %1365 }
 0x3bf   : > { %v1363_v51 = vpop.xlane.xlu0 %1362  ;;  %v1360_v53 = vpop.xlane.xlu1 %1359 }
 0x3c0   : > { %3695 = vrcp.f32 %v1363_v51 }
 0x3c1   : > { %3697 = vrcp.f32 %v1360_v53 }
 0x3c2   : > { %3699 = vrcp.f32 %v1366_v31 }
 0x3c3   : > { %v1520_v57 = vpop.permute.xlu0 %1519  ;;  %v1369_v61 = vpop.xlane.xlu1 %1368 }
 0x3c4   : > { %3701 = vrcp.f32 %v1369_v61  ;;  %3293 = vmatprep.mubr.msk.bf16.mxu0 %vm1192_vm0, %v1520_v57 }
 0x3c7   : > { %v1522_v62 = vpop.permute.xlu1 %1521 }
 0x3c8   : > { %3294 = vmatmul.mubr.msk.bf16.gmra.mxu0 %vm1192_vm0, %v1522_v62 }
 0x3cd   : > { %v3696_v0 = vpop.eup %3695 }
 0x3ce   : > { %v3698_v2 = vpop.eup %3697  ;;  %v1383_v24 = vmul.f32 %v3696_v0, %v4361_v15 }
 0x3cf   : > { %v3700_v29 = vpop.eup %3699  ;;  %v1382_v43 = vmul.f32 %v3698_v2, %v4359_v32 }
 0x3d0   : > { %v1384_v10 = vmul.f32 %v3700_v29, %v4355_v18  ;;  %v4414_v18 = vpop.f32.mrf.mxu0 }
 0x3d1   : > { %v3702_v3 = vpop.eup %3701  ;;  %v1388_v9 = vpack.c.bf16 %v1383_v24, %v1382_v43 }
 0x3d2   : > { %v1385_v12 = vmul.f32 %v3702_v3, %v4367_v7 }
 0x3d3   : > { %3277 = vmatprep.mubr.msk.bf16.mxu1 %vm1192_vm0, %v1388_v9 }
 0x3d4   : > { %v1389_v16 = vpack.c.bf16 %v1385_v12, %v1384_v10 }
 0x3d6   : > { %3278 = vmatmul.mubr.msk.bf16.gmra.mxu1 %vm1192_vm0, %v1389_v16 }
 0x3d7   : > { %3321 = vmatprep.mubr.msk.bf16.mxu1 %vm1192_vm0, %v4169_v50 }
 0x3de   : > { %3322 = vmatmul.mubr.msk.bf16.vlgmr.msra.gmra.mxu1 %vm1192_vm0, %v4175_v60 }
 0x3df   : > { %3325 = vmatprep.mubr.msk.bf16.mxu1 %vm1192_vm0, %v4179_v6 }
 0x3e6   : > { %3326 = vmatmul.mubr.msk.bf16.gmra.mxu1 %vm1192_vm0, %v4189_v17 }
 0x45b   : > { %v3291_v32 = vpop.f32.mrf.mxu0 }
 0x45c   : > { %v1626_v7 = vmul.f32 0.125, %v3291_v32 }
 0x45d   : > { %v1593_v15 = vpop.f32.mrf.mxu0 }
 0x45e   : > { %v1624_v19 = vmul.f32 0.125, %v1593_v15  ;;  %v3275_v20 = vpop.f32.mrf.mxu1  ;;  %v1634_v33 = vsel %vm1150_vm1, %v1626_v7, -inf }
 0x45f   : > { %1469 = vst.msk [vmem:[#allocation3 + $0x20] sm:$0xff] %vm1192_vm0, %v3275_v20  ;;  %v3292_v46 = vpop.f32.mrf.mxu0  ;;  %v1646_v38 = vsel %vm1192_vm0, %v1634_v33, -inf }
 0x460   : > { %v1436_v27 = vpop.f32.mrf.mxu1  ;;  %v1632_v23 = vsel %vm1148_vm2, %v1624_v19, -inf  ;;  %v1627_v25 = vmul.f32 0.125, %v3292_v46 }
 0x461   : > { %1467 = vst.msk [vmem:[#allocation3] sm:$0xff] %vm1192_vm0, %v1436_v27  ;;  %v1596_v1 = vpop.f32.mrf.mxu0  ;;  %v1640_v8 = vsel %vm1192_vm0, %v1632_v23, -inf }
 0x462   : > { %v1625_v26 = vmul.f32 0.125, %v1596_v1  ;;  %v3276_v28 = vpop.f32.mrf.mxu1  ;;  %1641 = vmax.xlane.f32.xlu0 %v1640_v8  ;;  %v1635_v13 = vsel %vm1151_vm3, %v1627_v25, -inf }
 0x463   : > { %1470 = vst.msk [vmem:[#allocation3 + $0x30] sm:$0xff] %vm1192_vm0, %v3276_v28  ;;  %v1649_v14 = vsel %vm1192_vm0, %v1635_v13, -inf }
 0x464   : > { %v1439_v34 = vpop.f32.mrf.mxu1  ;;  %v1633_v37 = vsel %vm1149_vm4, %v1625_v26, -inf }
 0x465   : > { %1468 = vst.msk [vmem:[#allocation3 + $0x10] sm:$0xff] %vm1192_vm0, %v1439_v34  ;;  %v1643_v41 = vsel %vm1192_vm0, %v1633_v37, -inf }
 0x466   : > { %1647 = vmax.xlane.f32.xlu0 %v1646_v38  ;;  %1644 = vmax.xlane.f32.xlu1 %v1643_v41 }
 0x46a   : > { %1650 = vmax.xlane.f32.xlu0 %v1649_v14 }
 0x488   : > { %v3295_v21 = vpop.f32.mrf.mxu0 }
 0x489   : > { %v1630_v31 = vmul.f32 0.125, %v3295_v21 }
 0x48a   : > { %v1609_v22 = vpop.f32.mrf.mxu0 }
 0x48b   : > { %v1628_v51 = vmul.f32 0.125, %v1609_v22  ;;  %v1638_v24 = vsel %vm1154_vm5, %v1630_v31, -inf }
 0x48c   : > { %v3296_v53 = vpop.f32.mrf.mxu0  ;;  %v1658_v43 = vsel %vm1192_vm0, %v1638_v24, -inf }
 0x48d   : > { %v1636_v57 = vsel %vm1152_vm6, %v1628_v51, -inf  ;;  %v1631_v0 = vmul.f32 0.125, %v3296_v53 }
 0x48e   : > { %v1612_v61 = vpop.f32.mrf.mxu0  ;;  %v1652_v62 = vsel %vm1192_vm0, %v1636_v57, -inf }
 0x48f   : > { %v1629_v2 = vmul.f32 0.125, %v1612_v61  ;;  %1653 = vmax.xlane.f32.xlu0 %v1652_v62  ;;  %v1639_v9 = vsel %vm1155_vm7, %v1631_v0, -inf }
 0x490   : > { %v1661_v12 = vsel %vm1192_vm0, %v1639_v9, -inf }
 0x491   : > { %v1637_v29 = vsel %vm1153_vm8, %v1629_v2, -inf }
 0x492   : > { %v1655_v3 = vsel %vm1192_vm0, %v1637_v29, -inf }
 0x493   : > { %1659 = vmax.xlane.f32.xlu0 %v1658_v43  ;;  %1656 = vmax.xlane.f32.xlu1 %v1655_v3 }
 0x496   : > { %v3279_v10 = vpop.f32.mrf.mxu1 }
 0x497   : > { %1473 = vst.msk [vmem:[#allocation3 + $0x60] sm:$0xff] %vm1192_vm0, %v3279_v10  ;;  %1662 = vmax.xlane.f32.xlu1 %v1661_v12 }
 0x498   : > { %v1452_v16 = vpop.f32.mrf.mxu1 }
 0x499   : > { %1471 = vst.msk [vmem:[#allocation3 + $0x40] sm:$0xff] %vm1192_vm0, %v1452_v16 }
 0x49a   : > { %v3280_v32 = vpop.f32.mrf.mxu1 }
 0x49b   : > { %1474 = vst.msk [vmem:[#allocation3 + $0x70] sm:$0xff] %vm1192_vm0, %v3280_v32 }
 0x49c   : > { %v1455_v15 = vpop.f32.mrf.mxu1 }
 0x49d   : > { %1472 = vst.msk [vmem:[#allocation3 + $0x50] sm:$0xff] %vm1192_vm0, %v1455_v15 }
 0x49e   : > { %v3323_v10 = vpop.f32.mrf.mxu1 }
 0x4a0   : > { %v1960_v15 = vpop.f32.mrf.mxu1 }
 0x4eb   : > { %v1642_v7 = vpop.xlane.xlu0 %1641 }
 0x4ec   : > { %v1664_v19 = vsub.f32 %v1632_v23, %v1642_v7  ;;  %v3324_v7 = vpop.f32.mrf.mxu1 }
 0x4ee   : > { %v1672_v1 = vmul.f32 1.442695, %v1664_v19  ;;  %v1963_v19 = vpop.f32.mrf.mxu1 }
 0x4ef   : > { %v1648_v20 = vpop.xlane.xlu0 %1647  ;;  %v1645_v46 = vpop.xlane.xlu1 %1644 }
 0x4f0   : > { %v1666_v27 = vsub.f32 %v1634_v33, %v1648_v20  ;;  %v1665_v25 = vsub.f32 %v1633_v37, %v1645_v46  ;;  %v3327_v46 = vpop.f32.mrf.mxu1 }
 0x4f2   : > { %v1676_v8 = vmul.f32 1.442695, %v1666_v27  ;;  %v1674_v34 = vmul.f32 1.442695, %v1665_v25  ;;  %v1991_v25 = vmul.f32 0.125, %v1960_v15 }
 0x4f3   : > { %v1651_v26 = vpop.xlane.xlu0 %1650 }
 0x4f4   : > { %3703 = vpow2.f32 %v1676_v8  ;;  %v1667_v28 = vsub.f32 %v1635_v13, %v1651_v26  ;;  %v1994_v26 = vmul.f32 0.125, %v3324_v7 }
 0x4f5   : > { %3705 = vpow2.f32 %v1672_v1 }
 0x4f6   : > { %v1678_v38 = vmul.f32 1.442695, %v1667_v28 }
 0x4f8   : > { %3707 = vpow2.f32 %v1678_v38 }
 0x4f9   : > { %3709 = vpow2.f32 %v1674_v34  ;;  %v1976_v34 = vpop.f32.mrf.mxu1 }
 0x4fa   : > { %v1995_v15 = vmul.f32 0.125, %v1976_v34 }
 0x501   : > { %v4456_v41 = vpop.eup %3703 }
 0x502   : > { %v1694_v14 = vsel %vm1192_vm0, %v4456_v41, 0.0  ;;  %v4460_v23 = vpop.eup %3705 }
 0x503   : > { %1695 = vadd.xlane.f32.xlu0 %v1694_v14  ;;  %v1688_v37 = vsel %vm1192_vm0, %v4460_v23, 0.0 }
 0x505   : > { %v4462_v33 = vpop.eup %3707 }
 0x506   : > { %v1697_v13 = vsel %vm1192_vm0, %v4462_v33, 0.0  ;;  %v4468_v21 = vpop.eup %3709 }
 0x507   : > { %1689 = vadd.xlane.f32.xlu0 %v1688_v37  ;;  %1698 = vadd.xlane.f32.xlu1 %v1697_v13  ;;  %v1691_v22 = vsel %vm1192_vm0, %v4468_v21, 0.0  ;;  %v1992_v37 = vmul.f32 0.125, %v1963_v19  ;;  %v4498_v13 = vsel %vm1148_vm2, %v1991_v25, -inf }
 0x50b   : > { %1692 = vadd.xlane.f32.xlu1 %v1691_v22  ;;  %v4503_v22 = vsel %vm1151_vm3, %v1994_v26, -inf }
 0x518   : > { %v1654_v31 = vpop.xlane.xlu0 %1653 }
 0x519   : > { %v1668_v51 = vsub.f32 %v1636_v57, %v1654_v31  ;;  %v3328_v31 = vpop.f32.mrf.mxu1 }
 0x51b   : > { %v1680_v0 = vmul.f32 1.442695, %v1668_v51  ;;  %v2007_v51 = vsel %vm1192_vm0, %v4498_v13, -inf }
 0x51c   : > { %v1660_v53 = vpop.xlane.xlu0 %1659  ;;  %v1657_v61 = vpop.xlane.xlu1 %1656 }
 0x51d   : > { %v1670_v62 = vsub.f32 %v1638_v24, %v1660_v53  ;;  %v1669_v43 = vsub.f32 %v1637_v29, %v1657_v61  ;;  %v1993_v29 = vmul.f32 0.125, %v3323_v10  ;;  %v2016_v53 = vsel %vm1192_vm0, %v4503_v22, -inf }
 0x51e   : > { %v1998_v61 = vmul.f32 0.125, %v3328_v31 }
 0x51f   : > { %v1684_v2 = vmul.f32 1.442695, %v1670_v62  ;;  %v1682_v16 = vmul.f32 1.442695, %v1669_v43  ;;  %v4489_v28 = vsel %vm1150_vm1, %v1993_v29, -inf  ;;  %v4512_v62 = vsel %vm1149_vm4, %v1992_v37, -inf }
 0x520   : > { %v1663_v3 = vpop.xlane.xlu1 %1662  ;;  %v2013_v38 = vsel %vm1192_vm0, %v4489_v28, -inf }
 0x521   : > { %3711 = vpow2.f32 %v1684_v2  ;;  %v1671_v12 = vsub.f32 %v1639_v9, %v1663_v3  ;;  %v2010_v2 = vsel %vm1192_vm0, %v4512_v62, -inf  ;;  %v4519_v3 = vsel %vm1155_vm7, %v1998_v61, -inf }
 0x522   : > { %3713 = vpow2.f32 %v1680_v0  ;;  %v1979_v0 = vpop.f32.mrf.mxu1  ;;  %v2028_v10 = vsel %vm1192_vm0, %v4519_v3, -inf }
 0x523   : > { %v1686_v32 = vmul.f32 1.442695, %v1671_v12  ;;  %v1996_v43 = vmul.f32 0.125, %v1979_v0 }
 0x525   : > { %3715 = vpow2.f32 %v1686_v32  ;;  %v4526_v12 = vsel %vm1153_vm8, %v1996_v43, -inf  ;;  %v1997_v32 = vmul.f32 0.125, %v3327_v46 }
 0x526   : > { %3717 = vpow2.f32 %v1682_v16  ;;  %v2022_v16 = vsel %vm1192_vm0, %v4526_v12, -inf }
 0x527   : > { %v4537_v7 = vsel %vm1154_vm5, %v1997_v32, -inf }
 0x528   : > { %v2025_v19 = vsel %vm1192_vm0, %v4537_v7, -inf }
 0x52e   : > { %v4472_v20 = vpop.eup %3711 }
 0x52f   : > { %v1706_v57 = vsel %vm1192_vm0, %v4472_v20, 0.0  ;;  %v4476_v24 = vpop.eup %3713 }
 0x530   : > { %1707 = vadd.xlane.f32.xlu0 %v1706_v57  ;;  %v1700_v9 = vsel %vm1192_vm0, %v4476_v24, 0.0  ;;  %v4544_v57 = vsel %vm1152_vm6, %v1995_v15, -inf }
 0x532   : > { %v4478_v27 = vpop.eup %3715 }
 0x533   : > { %v1709_v1 = vsel %vm1192_vm0, %v4478_v27, 0.0  ;;  %v4484_v8 = vpop.eup %3717 }
 0x534   : > { %1701 = vadd.xlane.f32.xlu0 %v1700_v9  ;;  %1710 = vadd.xlane.f32.xlu1 %v1709_v1  ;;  %v1703_v14 = vsel %vm1192_vm0, %v4484_v8, 0.0 }
 0x538   : > { %2014 = vmax.xlane.f32.xlu0 %v2013_v38  ;;  %1704 = vadd.xlane.f32.xlu1 %v1703_v14 }
 0x53c   : > { %2008 = vmax.xlane.f32.xlu0 %v2007_v51  ;;  %2017 = vmax.xlane.f32.xlu1 %v2016_v53 }
 0x540   : > { %2011 = vmax.xlane.f32.xlu1 %v2010_v2 }
 0x544   : > { %2029 = vmax.xlane.f32.xlu1 %v2028_v10 }
 0x548   : > { %2023 = vmax.xlane.f32.xlu1 %v2022_v16 }
 0x552   : > { %1742 = vrot.lane.b32.xlu0 %v4229_v45, %s3956_s21  ;;  %v2019_v45 = vsel %vm1192_vm0, %v4544_v57, -inf }
 0x559   : > { %1740 = vrot.lane.b32.xlu1 %v4227_v44, %s3956_s21 }
 0x571   : > { %2026 = vmax.xlane.f32.xlu0 %v2025_v19 }
 0x575   : > { %2020 = vmax.xlane.f32.xlu0 %v2019_v45 }
 0x58b   : > { %1738 = vrot.lane.b32.xlu0 %v4233_v47, %s3956_s21 }
 0x58c   : > { %v1696_v44 = vpop.xlane.xlu0 %1695 }
 0x58d   : > { %3719 = vrcp.f32 %v1696_v44 }
 0x58f   : > { %1736 = vrot.lane.b32.xlu0 %v4237_v48, %s3956_s21 }
 0x590   : > { %v1690_v29 = vpop.xlane.xlu0 %1689  ;;  %v1699_v46 = vpop.xlane.xlu1 %1698 }
 0x591   : > { %3721 = vrcp.f32 %v1699_v46 }
 0x592   : > { %3723 = vrcp.f32 %v1690_v29 }
 0x594   : > { %v1693_v9 = vpop.xlane.xlu1 %1692 }
 0x595   : > { %3725 = vrcp.f32 %v1693_v9 }
 0x59a   : > { %v3720_v1 = vpop.eup %3719 }
 0x59b   : > { %v4553_v34 = vmul.f32 %v3720_v1, %v4456_v41 }
 0x59e   : > { %v3722_v25 = vpop.eup %3721 }
 0x59f   : > { %v3724_v26 = vpop.eup %3723  ;;  %v4556_v38 = vmul.f32 %v3722_v25, %v4462_v33 }
 0x5a0   : > { %v1720_v14 = vmul.f32 %v3724_v26, %v4460_v23 }
 0x5a1   : > { %v1729_v48 = vpack.c.bf16 %v4556_v38, %v4553_v34 }
 0x5a2   : > { %v3726_v47 = vpop.eup %3725 }
 0x5a3   : > { %v1721_v37 = vmul.f32 %v3726_v47, %v4468_v21 }
 0x5a5   : > { %v1728_v31 = vpack.c.bf16 %v1721_v37, %v1720_v14 }
 0x5a7   : > { %3305 = vmatprep.mubr.msk.bf16.mxu0 %vm1192_vm0, %v1728_v31 }
 0x5b9   : > { %v1708_v51 = vpop.xlane.xlu0 %1707 }
 0x5ba   : > { %3727 = vrcp.f32 %v1708_v51 }
 0x5bd   : > { %v1702_v53 = vpop.xlane.xlu0 %1701  ;;  %v1711_v61 = vpop.xlane.xlu1 %1710 }
 0x5be   : > { %3729 = vrcp.f32 %v1711_v61 }
 0x5c1   : > { %v2015_v41 = vpop.xlane.xlu0 %2014  ;;  %v1705_v0 = vpop.xlane.xlu1 %1704 }
 0x5c2   : > { %v2033_v33 = vsub.f32 %v4489_v28, %v2015_v41 }
 0x5c4   : > { %v2043_v2 = vmul.f32 1.442695, %v2033_v33 }
 0x5c5   : > { %v2009_v43 = vpop.xlane.xlu0 %2008  ;;  %v2018_v10 = vpop.xlane.xlu1 %2017 }
 0x5c6   : > { %3731 = vpow2.f32 %v2043_v2  ;;  %v2031_v23 = vsub.f32 %v4498_v13, %v2009_v43  ;;  %v2034_v21 = vsub.f32 %v4503_v22, %v2018_v10 }
 0x5c7   : > { %v3728_v45 = vpop.eup %3727 }
 0x5c8   : > { %v2039_v16 = vmul.f32 1.442695, %v2031_v23  ;;  %v2045_v32 = vmul.f32 1.442695, %v2034_v21  ;;  %v4568_v9 = vmul.f32 %v3728_v45, %v4472_v20 }
 0x5c9   : > { %v1743_v15 = vpop.permute.xlu0 %1742  ;;  %v2012_v19 = vpop.xlane.xlu1 %2011 }
 0x5ca   : > { %3733 = vpow2.f32 %v2039_v16  ;;  %v2032_v44 = vsub.f32 %v4512_v62, %v2012_v19  ;;  %3297 = vmatprep.subr.bf16.mxu0 %v1743_v15  ;;  %v4602_v16 = vpack.c.bf16 %v4414_v18, %v4225_v42 }
 0x5cb   : > { %3298 = vmatpush3.bf16.msra.mxu0 %v1743_v15  ;;  %v3730_v29 = vpop.eup %3729  ;;  %3735 = vpow2.f32 %v2045_v32 }
 0x5cc   : > { %v2041_v28 = vmul.f32 1.442695, %v2032_v44  ;;  %v4571_v13 = vmul.f32 %v3730_v29, %v4478_v27 }
 0x5cd   : > { %v2030_v46 = vpop.xlane.xlu1 %2029 }
 0x5ce   : > { %v1731_v22 = vpack.c.bf16 %v4571_v13, %v4568_v9  ;;  %3737 = vpow2.f32 %v2041_v28  ;;  %v2038_v41 = vsub.f32 %v4519_v3, %v2030_v46 }
 0x5cf   : > { %3739 = vrcp.f32 %v1705_v0 }
 0x5d0   : > { %3741 = vrcp.f32 %v1702_v53  ;;  %v2053_v10 = vmul.f32 1.442695, %v2038_v41 }
 0x5d1   : > { %v2024_v1 = vpop.xlane.xlu1 %2023 }
 0x5d2   : > { %v2036_v23 = vsub.f32 %v4526_v12, %v2024_v1 }
 0x5d3   : > { %v4575_v25 = vpop.eup %3731 }
 0x5d4   : > { %v2061_v62 = vsel %vm1192_vm0, %v4575_v25, 0.0  ;;  %v2049_v53 = vmul.f32 1.442695, %v2036_v23 }
 0x5d5   : > { %2062 = vadd.xlane.f32.xlu1 %v2061_v62  ;;  %v1741_v26 = vpop.permute.xlu1 %1740 }
 0x5d6   : > { %3299 = vmatprep.subr.bf16.mxu0 %v1741_v26 }
 0x5d7   : > { %v4579_v47 = vpop.eup %3733  ;;  %3300 = vmatpush3.bf16.msra.mxu0 %v1741_v26 }
 0x5d8   : > { %v2055_v20 = vsel %vm1192_vm0, %v4579_v47, 0.0  ;;  %v4583_v27 = vpop.eup %3735 }
 0x5d9   : > { %2056 = vadd.xlane.f32.xlu1 %v2055_v20  ;;  %v2064_v14 = vsel %vm1192_vm0, %v4583_v27, 0.0 }
 0x5db   : > { %v4587_v37 = vpop.eup %3737 }
 0x5dc   : > { %v2058_v31 = vsel %vm1192_vm0, %v4587_v37, 0.0  ;;  %v3740_v0 = vpop.eup %3739 }
 0x5dd   : > { %2065 = vadd.xlane.f32.xlu1 %v2064_v14  ;;  %v1725_v3 = vmul.f32 %v3740_v0, %v4484_v8 }
 0x5e1   : > { %2059 = vadd.xlane.f32.xlu1 %v2058_v31 }
 0x5f2   : > { %2240 = vrot.lane.b32.xlu1 %v4177_v5, %s3956_s21 }
 0x5f6   : > { %2238 = vrot.lane.b32.xlu1 %v4173_v59, %s3956_s21  ;;  %v3742_v59 = vpop.eup %3741 }
 0x5f7   : > { %v1724_v12 = vmul.f32 %v3742_v59, %v4476_v24 }
 0x5fa   : > { %v2027_v51 = vpop.xlane.xlu0 %2026 }
 0x5fb   : > { %v2037_v61 = vsub.f32 %v4537_v7, %v2027_v51 }
 0x5fd   : > { %v2051_v33 = vmul.f32 1.442695, %v2037_v61 }
 0x5fe   : > { %v2021_v2 = vpop.xlane.xlu0 %2020 }
 0x5ff   : > { %3743 = vpow2.f32 %v2051_v33  ;;  %v2035_v43 = vsub.f32 %v4544_v57, %v2021_v2  ;;  %v1730_v57 = vpack.c.bf16 %v1725_v3, %v1724_v12 }
 0x601   : > { %v2047_v21 = vmul.f32 1.442695, %v2035_v43 }
 0x602   : > { %v1739_v5 = vpop.permute.xlu0 %1738 }
 0x603   : > { %3745 = vpow2.f32 %v2047_v21  ;;  %3301 = vmatprep.subr.bf16.mxu0 %v1739_v5 }
 0x604   : > { %3302 = vmatpush3.bf16.msra.mxu0 %v1739_v5  ;;  %3747 = vpow2.f32 %v2053_v10 }
 0x605   : > { %3749 = vpow2.f32 %v2049_v53 }
 0x606   : > { %v1737_v7 = vpop.permute.xlu0 %1736 }
 0x607   : > { %3303 = vmatprep.subr.bf16.mxu0 %v1737_v7 }
 0x608   : > { %3304 = vmatpush3.bf16.msra.mxu0 %v1737_v7 }
 0x609   : > { %3329 = vmatprep.subr.bf16.mxu0 %v4602_v16 }
 0x60b   : > { %3306 = vmatmul.mubr.msk.bf16.vlgmr.msra.gmra.mxu0 %vm1192_vm0, %v1729_v48 }
 0x60c   : > { %v4610_v32 = vpop.eup %3743  ;;  %3309 = vmatprep.mubr.msk.bf16.mxu0 %vm1192_vm0, %v1730_v57  ;;  %3330 = vmatpush3.bf16.msra.mxu0 %v4602_v16 }
 0x60d   : > { %3331 = vmatprep.subr.bf16.mxu0 %v4223_v40  ;;  %v2073_v42 = vsel %vm1192_vm0, %v4610_v32, 0.0 }
 0x60e   : > { %2074 = vadd.xlane.f32.xlu0 %v2073_v42 }
 0x610   : > { %v4617_v18 = vpop.eup %3745  ;;  %3332 = vmatpush3.bf16.msra.mxu0 %v4223_v40 }
 0x611   : > { %3333 = vmatprep.subr.bf16.mxu0 %v4221_v35  ;;  %v2067_v24 = vsel %vm1192_vm0, %v4617_v18, 0.0  ;;  %v3748_v8 = vpop.eup %3747 }
 0x612   : > { %2068 = vadd.xlane.f32.xlu0 %v2067_v24  ;;  %v2076_v34 = vsel %vm1192_vm0, %v3748_v8, 0.0  ;;  %v3750_v38 = vpop.eup %3749 }
 0x613   : > { %3310 = vmatmul.mubr.msk.bf16.gmra.mxu0 %vm1192_vm0, %v1731_v22  ;;  %v2070_v48 = vsel %vm1192_vm0, %v3750_v38, 0.0 }
 0x614   : > { %3334 = vmatpush3.bf16.msra.mxu0 %v4221_v35 }
 0x615   : > { %3335 = vmatprep.subr.bf16.mxu0 %v4217_v30 }
 0x616   : > { %2077 = vadd.xlane.f32.xlu0 %v2076_v34 }
 0x618   : > { %3336 = vmatpush3.bf16.msra.mxu0 %v4217_v30 }
 0x61a   : > { %2071 = vadd.xlane.f32.xlu1 %v2070_v48 }
 0x62b   : > { %2236 = vrot.lane.b32.xlu1 %v4167_v49, %s3956_s21 }
 0x62c   : > { %2242 = vrot.lane.b32.xlu0 %v4242_v52, %s3956_s21 }
 0x62f   : > { %2226 = vrot.lane.b32.xlu1 %v4175_v60, %s3956_s21 }
 0x630   : > { %2224 = vrot.lane.b32.xlu0 %v4169_v50, %s3956_s21 }
 0x633   : > { %2230 = vrot.lane.b32.xlu1 %v4189_v17, %s3956_s21 }
 0x634   : > { %2228 = vrot.lane.b32.xlu0 %v4179_v6, %s3956_s21 }
 0x65e   : > { %v2063_v15 = vpop.xlane.xlu1 %2062 }
 0x662   : > { %v2057_v19 = vpop.xlane.xlu1 %2056 }
 0x666   : > { %v2066_v45 = vpop.xlane.xlu1 %2065 }
 0x667   : > { %3751 = vrcp.f32 %v2066_v45 }
 0x668   : > { %3753 = vrcp.f32 %v2057_v19 }
 0x669   : > { %3755 = vrcp.f32 %v2063_v15 }
 0x66a   : > { %v2060_v49 = vpop.xlane.xlu1 %2059 }
 0x66b   : > { %3757 = vrcp.f32 %v2060_v49 }
 0x66e   : > { %v2241_v22 = vpop.permute.xlu1 %2240 }
 0x672   : > { %v2239_v62 = vpop.permute.xlu1 %2238 }
 0x673   : > { %v2260_v43 = vsel %vm1192_vm0, %v2239_v62, 0 }
 0x674   : > { %v3752_v52 = vpop.eup %3751 }
 0x675   : > { %v3754_v44 = vpop.eup %3753  ;;  %v2090_v50 = vmul.f32 %v3752_v52, %v4583_v27 }
 0x676   : > { %v3756_v60 = vpop.eup %3755  ;;  %v2087_v28 = vmul.f32 %v3754_v44, %v4579_v47 }
 0x677   : > { %v2089_v6 = vmul.f32 %v3756_v60, %v4575_v25  ;;  %v2263_v25 = vsel %vm1192_vm0, %v2241_v22, 0 }
 0x678   : > { %v3758_v29 = vpop.eup %3757 }
 0x679   : > { %v2088_v17 = vmul.f32 %v3758_v29, %v4587_v37  ;;  %v2096_v9 = vpack.c.bf16 %v2090_v50, %v2089_v6 }
 0x67b   : > { %v2095_v46 = vpack.c.bf16 %v2088_v17, %v2087_v28 }
 0x67d   : > { %3337 = vmatprep.mubr.msk.bf16.mxu0 %vm1192_vm0, %v2095_v46 }
 0x67e   : > { %3338 = vmatmul.mubr.msk.bf16.vlgmr.msra.gmra.mxu0 %vm1192_vm0, %v2096_v9 }
 0x697   : > { %v2075_v13 = vpop.xlane.xlu0 %2074 }
 0x69b   : > { %v2069_v1 = vpop.xlane.xlu0 %2068 }
 0x69f   : > { %v2078_v26 = vpop.xlane.xlu0 %2077 }
 0x6a0   : > { %3759 = vrcp.f32 %v2078_v26 }
 0x6a1   : > { %3761 = vrcp.f32 %v2069_v1 }
 0x6a2   : > { %3763 = vrcp.f32 %v2075_v13 }
 0x6a3   : > { %v2243_v20 = vpop.permute.xlu0 %2242  ;;  %v2072_v47 = vpop.xlane.xlu1 %2071 }
 0x6a4   : > { %v2266_v27 = vsel %vm1192_vm0, %v2243_v20, 0  ;;  %3765 = vrcp.f32 %v2072_v47  ;;  %3389 = vmatprep.subr.msk.bf16.mxu0 %vm1192_vm0, %v2243_v20 }
 0x6a5   : > { %3346 = vmatpush3.bf16.xpose.msra.mxu0 %v2266_v27 }
 0x6a6   : > { %3390 = vmatprep.subr.msk.bf16.mxu0 %vm1192_vm0, %v2241_v22 }
 0x6a7   : > { %v2237_v23 = vpop.permute.xlu1 %2236  ;;  %v2225_v5 = vpop.permute.xlu0 %2224 }
 0x6a8   : > { %v2257_v0 = vsel %vm1192_vm0, %v2237_v23, 0 }
 0x6ab   : > { %v2227_v59 = vpop.permute.xlu1 %2226  ;;  %v2229_v53 = vpop.permute.xlu0 %2228 }
 0x6ad   : > { %3348 = vmatpush3.bf16.xpose.msra.mxu0 %v2263_v25  ;;  %v3760_v14 = vpop.eup %3759 }
 0x6ae   : > { %3391 = vmatprep.subr.msk.bf16.mxu0 %vm1192_vm0, %v2239_v62  ;;  %v3762_v37 = vpop.eup %3761  ;;  %v2094_v61 = vmul.f32 %v3760_v14, %v3748_v8 }
 0x6af   : > { %v3764_v31 = vpop.eup %3763  ;;  %v2091_v41 = vmul.f32 %v3762_v37, %v4617_v18  ;;  %v2231_v7 = vpop.permute.xlu1 %2230 }
 0x6b0   : > { %v2093_v2 = vmul.f32 %v3764_v31, %v4610_v32 }
 0x6b1   : > { %v3766_v51 = vpop.eup %3765 }
 0x6b2   : > { %v2092_v33 = vmul.f32 %v3766_v51, %v3750_v38  ;;  %v2098_v21 = vpack.c.bf16 %v2094_v61, %v2093_v2 }
 0x6b4   : > { %v2097_v10 = vpack.c.bf16 %v2092_v33, %v2091_v41 }
 0x6b5   : > { %3350 = vmatpush3.bf16.xpose.msra.mxu0 %v2260_v43 }
 0x6b6   : > { %3341 = vmatprep.mubr.msk.bf16.mxu0 %vm1192_vm0, %v2097_v10  ;;  %3392 = vmatprep.subr.msk.bf16.mxu0 %vm1192_vm0, %v2237_v23 }
 0x6b7   : > { %3342 = vmatmul.mubr.msk.bf16.gmra.mxu0 %vm1192_vm0, %v2098_v21 }
 0x6b8   : > { %3353 = vmatprep.mubr.msk.bf16.mxu0 %vm1192_vm0, %v2225_v5 }
 0x6bd   : > { %3352 = vmatpush3.bf16.xpose.msra.mxu0 %v2257_v0 }
 0x6c4   : > { %3354 = vmatmul.mubr.msk.bf16.vlgmr.msra.gmra.mxu0 %vm1192_vm0, %v2227_v59 }
 0x6c5   : > { %3357 = vmatprep.mubr.msk.bf16.mxu0 %vm1192_vm0, %v2229_v53 }
 0x6cb   : > { %v4663_v3 = vpop.f32.mrf.mxu0 }
 0x6cc   : > { %3358 = vmatmul.mubr.msk.bf16.gmra.mxu0 %vm1192_vm0, %v2231_v7 }
 0x6cd   : > { %v4665_v12 = vpop.f32.mrf.mxu0 }
 0x6cf   : > { %v4667_v57 = vpop.f32.mrf.mxu0 }
 0x6d1   : > { %v4669_v32 = vpop.f32.mrf.mxu0 }
 0x6d3   : > { %v4671_v42 = vpop.f32.mrf.mxu0 }
 0x6d5   : > { %v4673_v18 = vpop.f32.mrf.mxu0 }
 0x6d7   : > { %v4675_v24 = vpop.f32.mrf.mxu0 }
 0x6d9   : > { %v4677_v8 = vpop.f32.mrf.mxu0 }
 0x73e   : > { %v3339_v34 = vpop.f32.mrf.mxu0 }
 0x73f   : > { %2178 = vst.msk [vmem:[#allocation3 + $0x28] sm:$0xff] %vm1192_vm0, %v3339_v34 }
 0x740   : > { %v2145_v38 = vpop.f32.mrf.mxu0 }
 0x741   : > { %2176 = vst.msk [vmem:[#allocation3 + $0x8] sm:$0xff] %vm1192_vm0, %v2145_v38 }
 0x742   : > { %v3340_v48 = vpop.f32.mrf.mxu0 }
 0x743   : > { %2179 = vst.msk [vmem:[#allocation3 + $0x38] sm:$0xff] %vm1192_vm0, %v3340_v48 }
 0x744   : > { %v2148_v15 = vpop.f32.mrf.mxu0 }
 0x745   : > { %2177 = vst.msk [vmem:[#allocation3 + $0x18] sm:$0xff] %vm1192_vm0, %v2148_v15 }
 0x777   : > { %v3343_v19 = vpop.f32.mrf.mxu0 }
 0x778   : > { %2182 = vst.msk [vmem:[#allocation3 + $0x68] sm:$0xff] %vm1192_vm0, %v3343_v19 }
 0x779   : > { %v2161_v45 = vpop.f32.mrf.mxu0 }
 0x77a   : > { %2180 = vst.msk [vmem:[#allocation3 + $0x48] sm:$0xff] %vm1192_vm0, %v2161_v45 }
 0x77b   : > { %v3344_v49 = vpop.f32.mrf.mxu0 }
 0x77c   : > { %2183 = vst.msk [vmem:[#allocation3 + $0x78] sm:$0xff] %vm1192_vm0, %v3344_v49 }
 0x77d   : > { %v2164_v52 = vpop.f32.mrf.mxu0 }
 0x77e   : > { %2181 = vst.msk [vmem:[#allocation3 + $0x58] sm:$0xff] %vm1192_vm0, %v2164_v52 }
 0x784   : > { %v3355_v44 = vpop.f32.mrf.mxu0 }
 0x785   : > { %v2335_v29 = vmul.f32 0.125, %v3355_v44 }
 0x786   : > { %v2302_v60 = vpop.f32.mrf.mxu0 }
 0x787   : > { %v2333_v50 = vmul.f32 0.125, %v2302_v60  ;;  %v2343_v22 = vsel %vm1150_vm1, %v2335_v29, -inf }
 0x788   : > { %v3356_v28 = vpop.f32.mrf.mxu0  ;;  %v2355_v20 = vsel %vm1192_vm0, %v2343_v22, -inf }
 0x789   : > { %v2341_v17 = vsel %vm1148_vm2, %v2333_v50, -inf  ;;  %v2336_v9 = vmul.f32 0.125, %v3356_v28 }
 0x78a   : > { %v2305_v6 = vpop.f32.mrf.mxu0  ;;  %v2349_v46 = vsel %vm1192_vm0, %v2341_v17, -inf }
 0x78b   : > { %v2334_v13 = vmul.f32 0.125, %v2305_v6  ;;  %2350 = vmax.xlane.f32.xlu0 %v2349_v46  ;;  %v2344_v25 = vsel %vm1151_vm3, %v2336_v9, -inf }
 0x78c   : > { %v3359_v1 = vpop.f32.mrf.mxu0  ;;  %v2358_v37 = vsel %vm1192_vm0, %v2344_v25, -inf }
 0x78d   : > { %v2342_v62 = vsel %vm1149_vm4, %v2334_v13, -inf  ;;  %v2339_v31 = vmul.f32 0.125, %v3359_v1 }
 0x78e   : > { %v2318_v26 = vpop.f32.mrf.mxu0  ;;  %v2352_v47 = vsel %vm1192_vm0, %v2342_v62, -inf }
 0x78f   : > { %v2337_v27 = vmul.f32 0.125, %v2318_v26  ;;  %2356 = vmax.xlane.f32.xlu0 %v2355_v20  ;;  %2353 = vmax.xlane.f32.xlu1 %v2352_v47  ;;  %v2347_v2 = vsel %vm1154_vm5, %v2339_v31, -inf }
 0x790   : > { %v3360_v14 = vpop.f32.mrf.mxu0  ;;  %v2367_v11 = vsel %vm1192_vm0, %v2347_v2, -inf }
 0x791   : > { %v2340_v51 = vmul.f32 0.125, %v3360_v14  ;;  %v2345_v61 = vsel %vm1152_vm6, %v2337_v27, -inf }
 0x792   : > { %v2321_v55 = vpop.f32.mrf.mxu0  ;;  %v2361_v33 = vsel %vm1192_vm0, %v2345_v61, -inf }
 0x793   : > { %v2338_v63 = vmul.f32 0.125, %v2321_v55  ;;  %2359 = vmax.xlane.f32.xlu0 %v2358_v37  ;;  %v2348_v43 = vsel %vm1155_vm7, %v2340_v51, -inf }
 0x794   : > { %v2370_v10 = vsel %vm1192_vm0, %v2348_v43, -inf }
 0x795   : > { %v2346_v41 = vsel %vm1153_vm8, %v2338_v63, -inf }
 0x796   : > { %v2364_v58 = vsel %vm1192_vm0, %v2346_v41, -inf }
 0x797   : > { %2362 = vmax.xlane.f32.xlu0 %v2361_v33  ;;  %2365 = vmax.xlane.f32.xlu1 %v2364_v58 }
 0x79b   : > { %2368 = vmax.xlane.f32.xlu0 %v2367_v11  ;;  %2371 = vmax.xlane.f32.xlu1 %v2370_v10 }
 0x7b1   : > { %2451 = vrot.lane.b32.xlu0 %v4602_v16, %s3956_s21 }
 0x814   : > { %v2351_v39 = vpop.xlane.xlu0 %2350 }
 0x815   : > { %v2373_v23 = vsub.f32 %v2341_v17, %v2351_v39 }
 0x817   : > { %v2381_v4 = vmul.f32 1.442695, %v2373_v23 }
 0x818   : > { %v2357_v21 = vpop.xlane.xlu0 %2356  ;;  %v2354_v5 = vpop.xlane.xlu1 %2353 }
 0x819   : > { %v2375_v0 = vsub.f32 %v2343_v22, %v2357_v21  ;;  %v2374_v53 = vsub.f32 %v2342_v62, %v2354_v5 }
 0x81b   : > { %v2385_v59 = vmul.f32 1.442695, %v2375_v0  ;;  %v2383_v36 = vmul.f32 1.442695, %v2374_v53 }
 0x81c   : > { %v2360_v7 = vpop.xlane.xlu0 %2359 }
 0x81d   : > { %3767 = vpow2.f32 %v2385_v59  ;;  %v2376_v56 = vsub.f32 %v2344_v25, %v2360_v7 }
 0x81e   : > { %3769 = vpow2.f32 %v2381_v4 }
 0x81f   : > { %v2387_v34 = vmul.f32 1.442695, %v2376_v56 }
 0x820   : > { %v2363_v38 = vpop.xlane.xlu0 %2362  ;;  %v2366_v48 = vpop.xlane.xlu1 %2365 }
 0x821   : > { %3771 = vpow2.f32 %v2387_v34  ;;  %v2377_v15 = vsub.f32 %v2345_v61, %v2363_v38  ;;  %v2378_v50 = vsub.f32 %v2346_v41, %v2366_v48 }
 0x822   : > { %3773 = vpow2.f32 %v2383_v36 }
 0x823   : > { %v2389_v49 = vmul.f32 1.442695, %v2377_v15  ;;  %v2391_v9 = vmul.f32 1.442695, %v2378_v50  ;;  %v3634_v50 = vld [vmem:[#allocation9 + $0x44] ss:$8 sps:$4 sm:$0xff]  }
 0x824   : > { %v2369_v16 = vpop.xlane.xlu0 %2368  ;;  %v2372_v19 = vpop.xlane.xlu1 %2371 }
 0x825   : > { %v2379_v45 = vsub.f32 %v2347_v2, %v2369_v16  ;;  %v2380_v44 = vsub.f32 %v2348_v43, %v2372_v19 }
 0x827   : > { %v2393_v52 = vmul.f32 1.442695, %v2379_v45  ;;  %v2395_v28 = vmul.f32 1.442695, %v2380_v44  ;;  %v3623_v45 = vld [vmem:[#allocation9 + $0x70] ss:$8 sps:$4 sm:$0xff]  }
 0x828   : > { %v2452_v60 = vpop.permute.xlu0 %2451  ;;  %v3626_v44 = vld [vmem:[#allocation9 + $0x60] ss:$8 sps:$4 sm:$0xff]  }
 0x829   : > { %3775 = vpow2.f32 %v2393_v52  ;;  %3361 = vmatprep.subr.bf16.mxu1 %v2452_v60  ;;  %v3628_v52 = vld [vmem:[#allocation9 + $0x64] ss:$8 sps:$4 sm:$0xff]  }
 0x82a   : > { %v4721_v29 = vpop.eup %3767  ;;  %3362 = vmatpush3.bf16.msra.mxu1 %v2452_v60  ;;  %3777 = vpow2.f32 %v2389_v49  ;;  %v3625_v49 = vld [vmem:[#allocation9 + $0x74] ss:$8 sps:$4 sm:$0xff]  }
 0x82b   : > { %v2403_v17 = vsel %vm1192_vm0, %v4721_v29, 0.0  ;;  %v3770_v6 = vpop.eup %3769  ;;  %3779 = vpow2.f32 %v2395_v28  ;;  %v3631_v60 = vld [vmem:[#allocation9 + $0x54] ss:$8 sps:$4 sm:$0xff]   ;;  %v3632_v28 = vld [vmem:[#allocation9 + $0x40] ss:$8 sps:$4 sm:$0xff]  }
 0x82c   : > { %2404 = vadd.xlane.f32.xlu0 %v2403_v17  ;;  %v2397_v13 = vsel %vm1192_vm0, %v3770_v6, 0.0  ;;  %3781 = vpow2.f32 %v2391_v9  ;;  %v3637_v17 = vld [vmem:[#allocation9 + $0x34] ss:$8 sps:$4 sm:$0xff]   ;;  %v3638_v9 = vld [vmem:[#allocation9 + $0x20] ss:$8 sps:$4 sm:$0xff]  }
 0x82e   : > { %v3772_v46 = vpop.eup %3771 }
 0x82f   : > { %v2406_v22 = vsel %vm1192_vm0, %v3772_v46, 0.0  ;;  %v3774_v1 = vpop.eup %3773 }
 0x830   : > { %2398 = vadd.xlane.f32.xlu0 %v2397_v13  ;;  %2407 = vadd.xlane.f32.xlu1 %v2406_v22  ;;  %v2400_v62 = vsel %vm1192_vm0, %v3774_v1, 0.0  ;;  %v3643_v13 = vld [vmem:[#allocation9 + $0x14] ss:$8 sps:$4 sm:$0xff]   ;;  %v3641_v22 = vld [vmem:[#allocation9 + $0x10] ss:$8 sps:$4 sm:$0xff]  }
 0x834   : > { %2401 = vadd.xlane.f32.xlu1 %v2400_v62  ;;  %v3644_v62 = vld [vmem:[#allocation9] ss:$8 sps:$4 sm:$0xff]  }
 0x836   : > { %v3776_v26 = vpop.eup %3775 }
 0x837   : > { %v2415_v20 = vsel %vm1192_vm0, %v3776_v26, 0.0  ;;  %v3778_v47 = vpop.eup %3777 }
 0x838   : > { %2416 = vadd.xlane.f32.xlu1 %v2415_v20  ;;  %v2409_v27 = vsel %vm1192_vm0, %v3778_v47, 0.0  ;;  %v3780_v25 = vpop.eup %3779  ;;  %v3647_v20 = vld [vmem:[#allocation9 + $0xf0] ss:$8 sps:$4 sm:$0xff]  }
 0x839   : > { %v2418_v14 = vsel %vm1192_vm0, %v3780_v25, 0.0  ;;  %v3782_v55 = vpop.eup %3781 }
 0x83a   : > { %v2412_v37 = vsel %vm1192_vm0, %v3782_v55, 0.0 }
 0x83c   : > { %2410 = vadd.xlane.f32.xlu1 %v2409_v27  ;;  %v3650_v27 = vld [vmem:[#allocation9 + $0xe0] ss:$8 sps:$4 sm:$0xff]  }
 0x840   : > { %2419 = vadd.xlane.f32.xlu1 %v2418_v14  ;;  %v3653_v14 = vld [vmem:[#allocation9 + $0xd0] ss:$8 sps:$4 sm:$0xff]  }
 0x844   : > { %2413 = vadd.xlane.f32.xlu1 %v2412_v37  ;;  %v3656_v37 = vld [vmem:[#allocation9 + $0xc0] ss:$8 sps:$4 sm:$0xff]  }
 0x846   : > { %2447 = vrot.lane.b32.xlu0 %v4221_v35, %s3956_s21 }
 0x84a   : > { %2445 = vrot.lane.b32.xlu0 %v4217_v30, %s3956_s21 }
 0x855   : > { %2449 = vrot.lane.b32.xlu1 %v4223_v40, %s3956_s21 }
 0x8b5   : > { %v2405_v31 = vpop.xlane.xlu0 %2404 }
 0x8b9   : > { %v2399_v51 = vpop.xlane.xlu0 %2398  ;;  %v2408_v63 = vpop.xlane.xlu1 %2407 }
 0x8ba   : > { %3783 = vrcp.f32 %v2399_v51  ;;  %v3661_v51 = vld [vmem:[#allocation9 + $0xb4] ss:$8 sps:$4 sm:$0xff]  }
 0x8bd   : > { %v2402_v61 = vpop.xlane.xlu1 %2401  ;;  %v2448_v40 = vpop.permute.xlu0 %2447 }
 0x8be   : > { %3785 = vrcp.f32 %v2402_v61  ;;  %v3664_v61 = vld [vmem:[#allocation9 + $0xa4] ss:$8 sps:$4 sm:$0xff]  }
 0x8bf   : > { %3787 = vrcp.f32 %v2408_v63  ;;  %v3662_v63 = vld [vmem:[#allocation9 + $0xa0] ss:$8 sps:$4 sm:$0xff]  }
 0x8c0   : > { %3789 = vrcp.f32 %v2405_v31  ;;  %v3659_v31 = vld [vmem:[#allocation9 + $0xb0] ss:$8 sps:$4 sm:$0xff]  }
 0x8c1   : > { %v2417_v41 = vpop.xlane.xlu1 %2416  ;;  %v2446_v5 = vpop.permute.xlu0 %2445 }
 0x8c5   : > { %v2411_v33 = vpop.xlane.xlu1 %2410 }
 0x8c6   : > { %3791 = vrcp.f32 %v2411_v33  ;;  %v3667_v33 = vld [vmem:[#allocation9 + $0x94] ss:$8 sps:$4 sm:$0xff]  }
 0x8c7   : > { %v3784_v58 = vpop.eup %3783 }
 0x8c8   : > { %v2429_v35 = vmul.f32 %v3784_v58, %v3770_v6  ;;  %v3635_v6 = vld [vmem:[#allocation9 + $0x30] ss:$8 sps:$4 sm:$0xff]  }
 0x8c9   : > { %v2420_v2 = vpop.xlane.xlu1 %2419 }
 0x8cb   : > { %v3786_v43 = vpop.eup %3785 }
 0x8cc   : > { %v2430_v11 = vmul.f32 %v3786_v43, %v3774_v1  ;;  %v3788_v23 = vpop.eup %3787  ;;  %v3646_v1 = vld [vmem:[#allocation9 + $0x4] ss:$8 sps:$4 sm:$0xff]   ;;  %v3668_v43 = vld [vmem:[#allocation9 + $0x80] ss:$8 sps:$4 sm:$0xff]  }
 0x8cd   : > { %v2414_v30 = vpop.xlane.xlu1 %2413  ;;  %v3790_v21 = vpop.eup %3789  ;;  %v2432_v0 = vmul.f32 %v3788_v23, %v3772_v46  ;;  %v3640_v46 = vld [vmem:[#allocation9 + $0x24] ss:$8 sps:$4 sm:$0xff]  }
 0x8ce   : > { %3793 = vrcp.f32 %v2414_v30  ;;  %v2437_v10 = vpack.c.bf16 %v2430_v11, %v2429_v35  ;;  %v2431_v59 = vmul.f32 %v3790_v21, %v4721_v29  ;;  %v3629_v29 = vld [vmem:[#allocation9 + $0x50] ss:$8 sps:$4 sm:$0xff]   ;;  %v3670_v35 = vld [vmem:[#allocation9 + $0x84] ss:$8 sps:$4 sm:$0xff]  }
 0x8cf   : > { %3795 = vrcp.f32 %v2420_v2 }
 0x8d0   : > { %3369 = vmatprep.mubr.msk.bf16.mxu1 %vm1192_vm0, %v2437_v10  ;;  %3797 = vrcp.f32 %v2417_v41  ;;  %v2438_v7 = vpack.c.bf16 %v2432_v0, %v2431_v59  ;;  %v3665_v41 = vld [vmem:[#allocation9 + $0x90] ss:$8 sps:$4 sm:$0xff]  }
 0x8d1   : > { %v2450_v39 = vpop.permute.xlu1 %2449 }
 0x8d2   : > { %3363 = vmatprep.subr.bf16.mxu1 %v2450_v39 }
 0x8d3   : > { %3364 = vmatpush3.bf16.msra.mxu1 %v2450_v39  ;;  %v3792_v4 = vpop.eup %3791 }
 0x8d4   : > { %3365 = vmatprep.subr.bf16.mxu1 %v2448_v40  ;;  %v2433_v56 = vmul.f32 %v3792_v4, %v3778_v47  ;;  %v3652_v47 = vld [vmem:[#allocation9 + $0xe4] ss:$8 sps:$4 sm:$0xff]  }
 0x8d7   : > { %3366 = vmatpush3.bf16.msra.mxu1 %v2448_v40 }
 0x8d8   : > { %3367 = vmatprep.subr.bf16.mxu1 %v2446_v5 }
 0x8db   : > { %v3794_v53 = vpop.eup %3793  ;;  %3368 = vmatpush3.bf16.msra.mxu1 %v2446_v5 }
 0x8dc   : > { %v2434_v36 = vmul.f32 %v3794_v53, %v3782_v55  ;;  %v3796_v34 = vpop.eup %3795  ;;  %2802 = vmatprep.subr.bf16.mxu1 %v3625_v49  ;;  %v3658_v55 = vld [vmem:[#allocation9 + $0xc4] ss:$8 sps:$4 sm:$0xff]  }
 0x8dd   : > { %v3798_v48 = vpop.eup %3797  ;;  %v2436_v15 = vmul.f32 %v3796_v34, %v3780_v25  ;;  %v3655_v25 = vld [vmem:[#allocation9 + $0xd4] ss:$8 sps:$4 sm:$0xff]  }
 0x8de   : > { %3370 = vmatmul.mubr.msk.bf16.vlgmr.msra.gmra.mxu1 %vm1192_vm0, %v2438_v7  ;;  %v2439_v38 = vpack.c.bf16 %v2434_v36, %v2433_v56  ;;  %v2435_v16 = vmul.f32 %v3798_v48, %v3776_v26  ;;  %v3649_v26 = vld [vmem:[#allocation9 + $0xf4] ss:$8 sps:$4 sm:$0xff]  }
 0x8df   : > { %2803 = vmatpush1.bf16.msra.mxu1 %v3623_v45 }
 0x8e0   : > { %3373 = vmatprep.mubr.msk.bf16.mxu1 %vm1192_vm0, %v2439_v38  ;;  %v2440_v19 = vpack.c.bf16 %v2436_v15, %v2435_v16  ;;  %2804 = vmatprep.subr.bf16.mxu1 %v3628_v52 }
 0x8e3   : > { %2805 = vmatpush1.bf16.msra.mxu1 %v3626_v44 }
 0x8e4   : > { %2806 = vmatprep.subr.bf16.mxu1 %v3631_v60 }
 0x8e6   : > { %3374 = vmatmul.mubr.msk.bf16.gmra.mxu1 %vm1192_vm0, %v2440_v19 }
 0x8e7   : > { %2807 = vmatpush1.bf16.msra.mxu1 %v3629_v29 }
 0x8e8   : > { %2808 = vmatprep.subr.bf16.mxu1 %v3634_v50 }
 0x8eb   : > { %2809 = vmatpush1.bf16.msra.mxu1 %v3632_v28 }
 0x8ec   : > { %2810 = vmatprep.subr.bf16.mxu1 %v3637_v17 }
 0x8ef   : > { %2811 = vmatpush1.bf16.msra.mxu1 %v3635_v6 }
 0x8f0   : > { %2812 = vmatprep.subr.bf16.mxu1 %v3640_v46 }
 0x8f3   : > { %2813 = vmatpush1.bf16.msra.mxu1 %v3638_v9 }
 0x8f4   : > { %2814 = vmatprep.subr.bf16.mxu1 %v3643_v13 }
 0x8f7   : > { %2815 = vmatpush1.bf16.msra.mxu1 %v3641_v22 }
 0x8f8   : > { %2816 = vmatprep.subr.bf16.mxu1 %v3646_v1 }
 0x8fb   : > { %2817 = vmatpush1.bf16.msra.mxu1 %v3644_v62 }
 0x8fc   : > { %2818 = vmatprep.subr.bf16.mxu1 %v3649_v26 }
 0x8ff   : > { %2819 = vmatpush2.bf16.msra.mxu1 %v3647_v20  ;;  %v2634_v20 = vsub.s32 0, %v4247_v54 }
 0x900   : > { %2820 = vmatprep.subr.bf16.mxu1 %v3652_v47  ;;  %v2630_v47 = vld [vmem:[%s4860_s3] sm:$0x3] }
 0x903   : > { %2821 = vmatpush2.bf16.msra.mxu1 %v3650_v27  ;;  %v2638_v27 = vsub.s32 1, %v4247_v54 }
 0x904   : > { %2822 = vmatprep.subr.bf16.mxu1 %v3655_v25  ;;  %v2635_v25 = vrot.slane %v2630_v47, %v2634_v20 }
 0x907   : > { %2823 = vmatpush2.bf16.msra.mxu1 %v3653_v14  ;;  %v2639_v14 = vrot.slane %v2630_v47, %v2638_v27 }
 0x908   : > { %2824 = vmatprep.subr.bf16.mxu1 %v3658_v55 }
 0x90b   : > { %2825 = vmatpush2.bf16.msra.mxu1 %v3656_v37 }
 0x90c   : > { %2826 = vmatprep.subr.bf16.mxu1 %v3661_v51 }
 0x90f   : > { %2827 = vmatpush2.bf16.msra.mxu1 %v3659_v31 }
 0x910   : > { %2828 = vmatprep.subr.bf16.mxu1 %v3664_v61 }
 0x913   : > { %2829 = vmatpush2.bf16.msra.mxu1 %v3662_v63 }
 0x914   : > { %2830 = vmatprep.subr.bf16.mxu1 %v3667_v33 }
 0x917   : > { %2831 = vmatpush2.bf16.msra.mxu1 %v3665_v41 }
 0x918   : > { %2832 = vmatprep.subr.bf16.mxu1 %v3670_v35 }
 0x91b   : > { %2833 = vmatpush2.bf16.msra.mxu1 %v3668_v43 }
 0x99e   : > { %v3371_v58 = vpop.f32.mrf.mxu1 }
 0x9a0   : > { %v2503_v2 = vpop.f32.mrf.mxu1 }
 0x9a1   : > { %2542 = vrot.lane.b32.xlu0 %v2503_v2, %s3956_s21 }
 0x9a2   : > { %v3372_v11 = vpop.f32.mrf.mxu1 }
 0x9a4   : > { %v2506_v30 = vpop.f32.mrf.mxu1 }
 0x9a5   : > { %1833 = vrot.lane.b32.xlu0 %v4665_v12, %s3956_s21  ;;  %2544 = vrot.lane.b32.xlu1 %v2506_v30, %s3956_s21 }
 0x9a6   : > { %v3375_v10 = vpop.f32.mrf.mxu1 }
 0x9a8   : > { %v2519_v40 = vpop.f32.mrf.mxu1 }
 0x9a9   : > { %2546 = vrot.lane.b32.xlu0 %v3371_v58, %s3956_s21  ;;  %1835 = vrot.lane.b32.xlu1 %v4669_v32, %s3956_s21 }
 0x9aa   : > { %v3376_v39 = vpop.f32.mrf.mxu1 }
 0x9ac   : > { %v2522_v12 = vpop.f32.mrf.mxu1 }
 0x9ad   : > { %1837 = vrot.lane.b32.xlu0 %v4663_v3, %s3956_s21  ;;  %2548 = vrot.lane.b32.xlu1 %v3372_v11, %s3956_s21 }
 0x9b1   : > { %1839 = vrot.lane.b32.xlu1 %v4667_v57, %s3956_s21  ;;  %2550 = vrot.lane.b32.xlu0 %v2519_v40, %s3956_s21 }
 0x9b5   : > { %1841 = vrot.lane.b32.xlu0 %v4673_v18, %s3956_s21  ;;  %2552 = vrot.lane.b32.xlu1 %v2522_v12, %s3956_s21 }
 0x9b9   : > { %2554 = vrot.lane.b32.xlu0 %v3375_v10, %s3956_s21  ;;  %1843 = vrot.lane.b32.xlu1 %v4677_v8, %s3956_s21 }
 0x9bd   : > { %1845 = vrot.lane.b32.xlu0 %v4671_v42, %s3956_s21  ;;  %2556 = vrot.lane.b32.xlu1 %v3376_v39, %s3956_s21 }
 0x9c1   : > { %1847 = vrot.lane.b32.xlu1 %v4675_v24, %s3956_s21 }
 0xa13   : > { %v2543_v3 = vpop.permute.xlu0 %2542 }
 0xa14   : > { %2566 = vst.msk [vmem:[#allocation3 + $0x8] sm:$0xff] %vm1857_vm9, %v2543_v3 }
 0xa17   : > { %v1834_v57 = vpop.permute.xlu0 %1833  ;;  %v2545_v32 = vpop.permute.xlu1 %2544 }
 0xa18   : > { %1858 = vst.msk [vmem:[#allocation3] sm:$0xff] %vm1857_vm9, %v1834_v57  ;;  %2567 = vst.msk [vmem:[#allocation3 + $0x18] sm:$0xff] %vm1857_vm9, %v2545_v32 }
 0xa1b   : > { %v2547_v18 = vpop.permute.xlu0 %2546  ;;  %v1836_v8 = vpop.permute.xlu1 %1835  ;;  %v2575_v21 = vld [vmem:[#allocation3 + $0x8] sm:$0xff] }
 0xa1c   : > { %2568 = vst.msk [vmem:[#allocation3 + $0x28] sm:$0xff] %vm1857_vm9, %v2547_v18  ;;  %1859 = vst.msk [vmem:[#allocation3 + $0x10] sm:$0xff] %vm1857_vm9, %v1836_v8 }
 0xa1f   : > { %v1838_v42 = vpop.permute.xlu0 %1837  ;;  %v2549_v23 = vpop.permute.xlu1 %2548  ;;  %v2577_v24 = vld [vmem:[#allocation3 + $0x18] sm:$0xff]  ;;  %v2574_v59 = vld [vmem:[#allocation3] sm:$0xff] }
 0xa20   : > { %1860 = vst.msk [vmem:[#allocation3 + $0x20] sm:$0xff] %vm1857_vm9, %v1838_v42  ;;  %2569 = vst.msk [vmem:[#allocation3 + $0x38] sm:$0xff] %vm1857_vm9, %v2549_v23  ;;  %v2591_v5 = vpack.c.bf16 %v2577_v24, %v2575_v21 }
 0xa22   : > { %2834 = vmatprep.mubr.bf16.mxu1 %v2591_v5 }
 0xa23   : > { %v1840_v0 = vpop.permute.xlu1 %1839  ;;  %v2551_v4 = vpop.permute.xlu0 %2550  ;;  %v2576_v53 = vld [vmem:[#allocation3 + $0x10] sm:$0xff]  ;;  %v2579_v34 = vld [vmem:[#allocation3 + $0x28] sm:$0xff] }
 0xa24   : > { %1861 = vst.msk [vmem:[#allocation3 + $0x30] sm:$0xff] %vm1857_vm9, %v1840_v0  ;;  %2570 = vst.msk [vmem:[#allocation3 + $0x48] sm:$0xff] %vm1857_vm9, %v2551_v4  ;;  %v2590_v7 = vpack.c.bf16 %v2576_v53, %v2574_v59 }
 0xa26   : > { %2835 = vmatmul.mubr.bf16.vlgmr.msra.gmra.mxu1 %v2590_v7 }
 0xa27   : > { %v1842_v56 = vpop.permute.xlu0 %1841  ;;  %v2553_v36 = vpop.permute.xlu1 %2552  ;;  %v2581_v38 = vld [vmem:[#allocation3 + $0x38] sm:$0xff]  ;;  %v2578_v19 = vld [vmem:[#allocation3 + $0x20] sm:$0xff] }
 0xa28   : > { %1862 = vst.msk [vmem:[#allocation3 + $0x40] sm:$0xff] %vm1857_vm9, %v1842_v56  ;;  %2571 = vst.msk [vmem:[#allocation3 + $0x58] sm:$0xff] %vm1857_vm9, %v2553_v36  ;;  %v2593_v48 = vpack.c.bf16 %v2581_v38, %v2579_v34 }
 0xa2a   : > { %2844 = vmatprep.mubr.bf16.mxu1 %v2593_v48 }
 0xa2b   : > { %v2555_v15 = vpop.permute.xlu0 %2554  ;;  %v1844_v16 = vpop.permute.xlu1 %1843  ;;  %v2580_v45 = vld [vmem:[#allocation3 + $0x30] sm:$0xff]  ;;  %v2583_v60 = vld [vmem:[#allocation3 + $0x48] sm:$0xff] }
 0xa2c   : > { %2572 = vst.msk [vmem:[#allocation3 + $0x68] sm:$0xff] %vm1857_vm9, %v2555_v15  ;;  %1863 = vst.msk [vmem:[#allocation3 + $0x50] sm:$0xff] %vm1857_vm9, %v1844_v16  ;;  %v2592_v49 = vpack.c.bf16 %v2580_v45, %v2578_v19 }
 0xa2e   : > { %2845 = vmatmul.mubr.bf16.gmra.mxu1 %v2592_v49 }
 0xa2f   : > { %v1846_v52 = vpop.permute.xlu0 %1845  ;;  %v2557_v44 = vpop.permute.xlu1 %2556  ;;  %v2585_v29 = vld [vmem:[#allocation3 + $0x58] sm:$0xff]  ;;  %v2582_v17 = vld [vmem:[#allocation3 + $0x40] sm:$0xff] }
 0xa30   : > { %1864 = vst.msk [vmem:[#allocation3 + $0x60] sm:$0xff] %vm1857_vm9, %v1846_v52  ;;  %2573 = vst.msk [vmem:[#allocation3 + $0x78] sm:$0xff] %vm1857_vm9, %v2557_v44  ;;  %v2595_v50 = vpack.c.bf16 %v2585_v29, %v2583_v60 }
 0xa32   : > { %2854 = vmatprep.mubr.bf16.mxu1 %v2595_v50 }
 0xa33   : > { %v1848_v28 = vpop.permute.xlu1 %1847  ;;  %v2584_v6 = vld [vmem:[#allocation3 + $0x50] sm:$0xff]  ;;  %v2587_v9 = vld [vmem:[#allocation3 + $0x68] sm:$0xff] }
 0xa34   : > { %1865 = vst.msk [vmem:[#allocation3 + $0x70] sm:$0xff] %vm1857_vm9, %v1848_v28  ;;  %v2594_v46 = vpack.c.bf16 %v2584_v6, %v2582_v17 }
 0xa36   : > { %2855 = vmatmul.mubr.bf16.gmra.mxu1 %v2594_v46 }
 0xa37   : > { %v2589_v13 = vld [vmem:[#allocation3 + $0x78] sm:$0xff]  ;;  %v2586_v1 = vld [vmem:[#allocation3 + $0x60] sm:$0xff] }
 0xa38   : > { %v2597_v22 = vpack.c.bf16 %v2589_v13, %v2587_v9 }
 0xa3a   : > { %2864 = vmatprep.mubr.bf16.mxu1 %v2597_v22 }
 0xa3b   : > { %v2588_v62 = vld [vmem:[#allocation3 + $0x70] sm:$0xff] }
 0xa3c   : > { %v2596_v26 = vpack.c.bf16 %v2588_v62, %v2586_v1 }
 0xa3e   : > { %2865 = vmatmul.mubr.bf16.gmra.mxu1 %v2596_v26 }
 0xae6   : > { %v2836_v55 = vpop.f32.mrf.mxu1 }
 0xae7   : > { %v2837_v37 = vadd.f32 %v2836_v55, %v2635_v25 }
 0xae8   : > { %v2838_v31 = vpop.f32.mrf.mxu1 }
 0xae9   : > { %2875 = vst [vmem:[%s4789_s5] sm:$0xff] %v2837_v37  ;;  %v2839_v51 = vadd.f32 %v2838_v31, %v2639_v14 }
 0xaea   : > { %v2840_v63 = vpop.f32.mrf.mxu1 }
 0xaeb   : > { %2876 = vst [vmem:[%s4789_s5 + $0x8] sm:$0xff] %v2839_v51  ;;  %v2841_v54 = vadd.f32 %v2840_v63, %v2635_v25 }
 0xaec   : > { %v2842_v61 = vpop.f32.mrf.mxu1 }
 0xaed   : > { %2877 = vst [vmem:[%s4789_s5 + $0x10] sm:$0xff] %v2841_v54  ;;  %v2843_v41 = vadd.f32 %v2842_v61, %v2639_v14 }
 0xaee   : > { %v2846_v33 = vpop.f32.mrf.mxu1 }
 0xaef   : > { %2878 = vst [vmem:[%s4789_s5 + $0x18] sm:$0xff] %v2843_v41  ;;  %v2847_v58 = vadd.f32 %v2846_v33, %v2635_v25 }
 0xaf0   : > { %v2848_v2 = vpop.f32.mrf.mxu1 }
 0xaf1   : > { %2879 = vst [vmem:[%s4789_s5 + $0x20] sm:$0xff] %v2847_v58  ;;  %v2849_v43 = vadd.f32 %v2848_v2, %v2639_v14 }
 0xaf2   : > { %v2850_v35 = vpop.f32.mrf.mxu1 }
 0xaf3   : > { %2880 = vst [vmem:[%s4789_s5 + $0x28] sm:$0xff] %v2849_v43  ;;  %v2851_v11 = vadd.f32 %v2850_v35, %v2635_v25 }
 0xaf4   : > { %v2852_v30 = vpop.f32.mrf.mxu1 }
 0xaf5   : > { %2881 = vst [vmem:[%s4789_s5 + $0x30] sm:$0xff] %v2851_v11  ;;  %v2853_v10 = vadd.f32 %v2852_v30, %v2639_v14 }
 0xaf6   : > { %v2856_v40 = vpop.f32.mrf.mxu1 }
 0xaf7   : > { %2882 = vst [vmem:[%s4789_s5 + $0x38] sm:$0xff] %v2853_v10  ;;  %v2857_v39 = vadd.f32 %v2856_v40, %v2635_v25 }
 0xaf8   : > { %v2858_v12 = vpop.f32.mrf.mxu1 }
 0xaf9   : > { %2883 = vst [vmem:[%s4789_s5 + $0x40] sm:$0xff] %v2857_v39  ;;  %v2859_v3 = vadd.f32 %v2858_v12, %v2639_v14 }
 0xafa   : > { %v2860_v57 = vpop.f32.mrf.mxu1 }
 0xafb   : > { %2884 = vst [vmem:[%s4789_s5 + $0x48] sm:$0xff] %v2859_v3  ;;  %v2861_v32 = vadd.f32 %v2860_v57, %v2635_v25 }
 0xafc   : > { %v2862_v18 = vpop.f32.mrf.mxu1 }
 0xafd   : > { %2885 = vst [vmem:[%s4789_s5 + $0x50] sm:$0xff] %v2861_v32  ;;  %v2863_v8 = vadd.f32 %v2862_v18, %v2639_v14 }
 0xafe   : > { %v2866_v42 = vpop.f32.mrf.mxu1 }
 0xaff   : > { %2886 = vst [vmem:[%s4789_s5 + $0x58] sm:$0xff] %v2863_v8  ;;  %v2867_v23 = vadd.f32 %v2866_v42, %v2635_v25 }
 0xb00   : > { %v2868_v21 = vpop.f32.mrf.mxu1 }
 0xb01   : > { %2887 = vst [vmem:[%s4789_s5 + $0x60] sm:$0xff] %v2867_v23  ;;  %v2869_v24 = vadd.f32 %v2868_v21, %v2639_v14 }
 0xb02   : > { %v2870_v5 = vpop.f32.mrf.mxu1 }
 0xb03   : > { %2888 = vst [vmem:[%s4789_s5 + $0x68] sm:$0xff] %v2869_v24  ;;  %v2871_v0 = vadd.f32 %v2870_v5, %v2635_v25 }
 0xb04   : > { %v2872_v4 = vpop.f32.mrf.mxu1 }
 0xb05   : > { %2889 = vst [vmem:[%s4789_s5 + $0x70] sm:$0xff] %v2871_v0  ;;  %v2873_v59 = vadd.f32 %v2872_v4, %v2639_v14 }
 0xb07   : > { %2890 = vst [vmem:[%s4789_s5 + $0x78] sm:$0xff] %v2873_v59 }
 0xb08   : > { %3892 = shalt.err (!%p3889_p9)
}
 0xb09   : > { %s3893_s27 = scalar_lea.hbm %s4810_s26, 2048  ;;  %s3897_s23 = scalar_lea.hbm %s4861_s4, 4096 }
 0xb0a   : > { %p3894_p13 = scmp.ne.s32.totalorder %s4810_s26, %s3893_s27  ;;  %p3898_p4 = scmp.lt.s32.totalorder %s4810_s26, %s4861_s4 }
 0xb0b   : > { %p3899_p8 = scmp.lt.s32.totalorder %s3897_s23, %s3893_s27 }
 0xb0c   : > { %p3895_p5 = pnand %p3894_p13, %p4877_p10 }
 0xb0d   : > { %p3900_p7 = por %p3899_p8, %p3898_p4 }
 0xb0e   : > { %p3896_p0 = pneg %p3895_p5 }
 0xb10   : > { %p3901_p11 = pnand %p3900_p7, %p3896_p0 }
 0xb12   : > { %3904 = shalt.err (!%p3901_p11)
}
 0xb13   : > { %s3958_s5 = smov 256   ;;  %s3959_s7 = smov 16  }
 0xb14   : > { %3403 = dma.vmem_to_hbm [thread:$0]  (%p4877_p10), %s4812_s8, 2048, %s4810_s26, %s2892_s30, %s3958_s5, %s3958_s5, %s3959_s7  }
 0xb15 PF: > { %s2920_s11 = sand.u32 1, %s3935_s15   ;;  %p4878_p1 = scmp.ne.s32.totalorder %s4867_s22, 0 }
 0xb16   : > { %p4879_p2 = scmp.ge.s32.totalorder %s3947_s18, 2  ;;  %s2921_s29 = scalar_lea.sflag [#allocation6], %s2920_s11 }
 0xb18   : > { %p3417_p6 = pnand %p4879_p2, %p4878_p1 }
 0xb1a   : > { %p3418_p12 = pneg %p3417_p6 }
 0xb1c   : > { %3930 = dma.done.wait (%p3418_p12), %s2921_s29, 2048  }
 0xb1d   : > { %3932 = vsyncadd (%p3418_p12), %s2921_s29, 4294965248  ;;  %p18_p3 = scmp.ge.s32.totalorder %s4060_s13, 4   ;;  %s4880_s15 = smov %s3939_s16 }
 0xb1e   : > { %s4881_s16 = smov %s3943_s17  ;;  %s4882_s17 = smov %s4069_s24 }
 0xb1f   : > { %s4883_s18 = smov %s4060_s13  ;;  %20 = sbr.rel (!%p18_p3) target bundleno = 6 (0x6), region = 89 }
 0xb24   :  { %2926 = vsyncpa [#allocation5], 1 }
 0xb25   :  { %2928 = vsyncpa [#allocation5 + $0x1], 1 }
 0xb26   :  { %2929 = vsyncpa [#allocation8], 1 }
 0xb27   :  { %2930 = vsyncpa [#allocation6], 1 }
 0xb28   :  { %2932 = vsyncpa [#allocation6 + $0x1], 1 }

</bundles_post_ra>
